<compile_context>
chip_gen: v7x
topology: tpu7x:2x2x1
jax: 0.10.0
libtpu: 0.0.40
codegen_flags: <defaults>
</compile_context>

<pallas_src>
import functools

import jax
import jax.numpy as jnp
from jax.experimental import pallas as pl
from jax.experimental.pallas import tpu as pltpu


def _mhsa_kernel(x_ref, w_ref, b_ref, mask_ref, *rest, heads, pos, compute_dtype):
    # x_ref:    (C, Np)        one batch element, channels x padded spatial (lane-dense)
    # w_ref:    (3C, C)        fused [Wq; Wk; Wv]          (resident, DMA'd once)
    # b_ref:    (3C, 1)        fused [bq; bk; bv]          (resident)
    # mask_ref: (1, Np)        additive key-pad bias: 0 valid / -1e30 padded (resident)
    # rel_ref:  (heads, d, Np) optional lane-dense (rel_h + rel_w)            (resident)
    # out_ref:  (C, Np)
    if pos:
        rel_ref, out_ref = rest
    else:
        (out_ref,) = rest

    C, n_pad = x_ref.shape
    d = C // heads
    cd = compute_dtype

    # Single fused projection matmul for all heads and q/k/v at once, then one
    # broadcast bias add (accumulate in f32 regardless of compute dtype).
    qkv = jnp.dot(w_ref[...].astype(cd), x_ref[...].astype(cd),
                  preferred_element_type=jnp.float32)             # (3C, Np) f32
    qkv = qkv + b_ref[...]                                        # (3C, 1) broadcast

    q = qkv[0 * C:1 * C, :].reshape(heads, d, n_pad)
    k = qkv[1 * C:2 * C, :].reshape(heads, d, n_pad)
    v = qkv[2 * C:3 * C, :].reshape(heads, d, n_pad)

    # content_content[h, n, m] = sum_d q[h,d,n] * k[h,d,m]  (no transposes)
    energy = jnp.einsum("hdn,hdm->hnm", q.astype(cd), k.astype(cd),
                        preferred_element_type=jnp.float32)       # (heads, Np, Np)
    if pos:
        # content_position[h, n, m] = sum_d rel[h,d,n] * q[h,d,m]
        energy = energy + jnp.einsum("hdn,hdm->hnm",
                                     rel_ref[...].astype(cd), q.astype(cd),
                                     preferred_element_type=jnp.float32)

    # Additive key-padding mask (all zeros when N is already a multiple of 128).
    energy = energy + mask_ref[...]

    # Numerically-stable softmax over keys, in f32, exact divide.
    m = jnp.max(energy, axis=-1, keepdims=True)
    p = jnp.exp(energy - m)
    s = jnp.sum(p, axis=-1, keepdims=True)
    att = p / s

    # out[h, d, n] = sum_m v[h,d,m] * att[h,n,m]    ( = v @ att^T )
    out = jnp.einsum("hdm,hnm->hdn", v.astype(cd), att.astype(cd),
                     preferred_element_type=jnp.float32)          # (heads, d, Np)
    out_ref[...] = out.reshape(C, n_pad).astype(out_ref.dtype)


def mhsa_forward(x, params, *, heads, pos, compute_dtype=jnp.float32):
    B, C, W, H = x.shape
    assert C % heads == 0
    N = W * H
    d = C // heads
    Np = pl.cdiv(N, 128) * 128                      # lane-dense padded spatial dim

    # Spatial dim zero-padded to Np (padded key/value columns are masked below).
    x_p = jnp.zeros((B, C, Np), x.dtype).at[:, :, :N].set(x.reshape(B, C, N))

    # Fused projection weights / biases for all heads + q/k/v.
    w_all = jnp.concatenate([params["wq"], params["wk"], params["wv"]], axis=0)       # (3C, C)
    b_all = jnp.concatenate([params["bq"], params["bk"], params["bv"]],
                            axis=0).reshape(3 * C, 1).astype(jnp.float32)             # (3C, 1)

    # Resident additive key-padding bias row: 0 for valid keys, -1e30 for pad.
    mask = jnp.where(jnp.arange(Np) < N, jnp.float32(0), jnp.float32(-1e30)).reshape(1, Np)

    in_specs = [
        pl.BlockSpec((None, C, Np), lambda b: (b, 0, 0)),   # x: one batch / grid step
        pl.BlockSpec((3 * C, C), lambda b: (0, 0)),         # fused weights (resident)
        pl.BlockSpec((3 * C, 1), lambda b: (0, 0)),         # fused bias (resident)
        pl.BlockSpec((1, Np), lambda b: (0, 0)),            # key-pad mask row (resident)
    ]
    args = [x_p, w_all, b_all, mask]

    if pos:
        # (1,heads,d,1,H) + (1,heads,d,W,1) -> (heads, d, N), lane-dense last dim.
        rel = (params["rel_h"] + params["rel_w"]).reshape(heads, d, N)
        rel = jnp.pad(rel, ((0, 0), (0, 0), (0, Np - N))).astype(x.dtype)
        in_specs.append(pl.BlockSpec((heads, d, Np), lambda b: (0, 0, 0)))
        args.append(rel)

    kern = functools.partial(_mhsa_kernel, heads=heads, pos=pos,
                             compute_dtype=compute_dtype)

    out = pl.pallas_call(
        kern,
        out_shape=jax.ShapeDtypeStruct((B, C, Np), x.dtype),
        grid=(B,),
        in_specs=in_specs,
        out_specs=pl.BlockSpec((None, C, Np), lambda b: (b, 0, 0)),
        compiler_params=pltpu.CompilerParams(
            dimension_semantics=("parallel",),
            vmem_limit_bytes=48 * 1024 * 1024),
    )(*args)

    # (B, C, Np) -> strip spatial padding -> NCHW
    return out[:, :, :N].reshape(B, C, W, H)


def mhsa_reference(x, params, *, heads, pos):
    """Plain-JAX mirror of the PyTorch forward (true-f32 precision)."""
    B, C, W, H = x.shape
    N = W * H
    d = C // heads
    hp = jax.lax.Precision.HIGHEST
    xf = x.reshape(B, C, N)

    def proj(w, b):
        y = jnp.einsum("oc,bcn->bon", w, xf, precision=hp) + b[None, :, None]
        return y.reshape(B, heads, d, N)

    q = proj(params["wq"], params["bq"])
    k = proj(params["wk"], params["bk"])
    v = proj(params["wv"], params["bv"])

    cc = jnp.einsum("bhdn,bhdm->bhnm", q, k, precision=hp)          # q^T k
    if pos:
        rel = (params["rel_h"] + params["rel_w"]).reshape(1, heads, d, N)
        rel = jnp.transpose(rel, (0, 1, 3, 2))                      # (1, heads, N, d)
        energy = cc + jnp.einsum("xhnd,bhdm->bhnm", rel, q, precision=hp)
    else:
        energy = cc
    att = jax.nn.softmax(energy, axis=-1)
    out = jnp.einsum("bhdm,bhnm->bhdn", v, att, precision=hp)       # v @ att^T
    return out.reshape(B, C, W, H)


def init_params(key, C, heads, W, H, pos):
    d = C // heads
    ks = jax.random.split(key, 8)
    params = {
        "wq": jax.random.normal(ks[0], (C, C), jnp.float32) * 0.05,
        "wk": jax.random.normal(ks[1], (C, C), jnp.float32) * 0.05,
        "wv": jax.random.normal(ks[2], (C, C), jnp.float32) * 0.05,
        "bq": jax.random.normal(ks[3], (C,), jnp.float32) * 0.2,
        "bk": jax.random.normal(ks[4], (C,), jnp.float32) * 0.2,
        "bv": jax.random.normal(ks[5], (C,), jnp.float32) * 0.2,
    }
    if pos:
        params["rel_h"] = jax.random.normal(ks[6], (1, heads, d, 1, H), jnp.float32) * 0.25
        params["rel_w"] = jax.random.normal(ks[7], (1, heads, d, W, 1), jnp.float32) * 0.25
    return params


if __name__ == "__main__":
    B, C, W, H = 2, 32, 8, 8
    heads = 4

    key = jax.random.PRNGKey(0)
    kx, kp = jax.random.split(key)
    x = jax.random.normal(kx, (B, C, W, H), jnp.float32)

    # Exercise both the relative-position and no-position branches (f32 path).
    ok = True
    for pos in (True, False):
        params = init_params(kp, C, heads, W, H, pos)
        out = jax.block_until_ready(mhsa_forward(x, params, heads=heads, pos=pos))
        assert out.shape == (B, C, W, H)
        ref = mhsa_reference(x, params, heads=heads, pos=pos)
        # Tolerance covers the MXU's reduced-precision f32 pathways across TPU
        # generations; structural/indexing bugs produce O(0.1+) deviations.
        ok = ok and bool(jnp.allclose(out, ref, atol=2e-2, rtol=2e-2))
    assert ok, "mismatch vs reference"

    print("KERNEL_OK")
</pallas_src>

<mosaic_0001>
module attributes {stable_mosaic.version = 11 : i64} {
  func.func @_mhsa_kernel(%arg0: i32, %arg1: memref<1x32x128xf32, #tpu.memory_space<vmem>>, %arg2: memref<96x32xf32, #tpu.memory_space<vmem>>, %arg3: memref<96x1xf32, #tpu.memory_space<vmem>>, %arg4: memref<1x128xf32, #tpu.memory_space<vmem>>, %arg5: memref<4x8x128xf32, #tpu.memory_space<vmem>>, %arg6: memref<1x32x128xf32, #tpu.memory_space<vmem>>) attributes {dimension_semantics = [#tpu.dimension_semantics<parallel>], iteration_bounds = array<i64: 2>, scalar_prefetch = 0 : i64, scratch_operands = 0 : i64, tpu.core_type = #tpu.core_type<tc>, window_params = [{transform_indices = @transform_0, window_bounds = array<i64: 1, 32, 128>}, {pipeline_mode = #tpu.pipeline_mode<synchronous>, transform_indices = @transform_1, window_bounds = array<i64: 96, 32>}, {pipeline_mode = #tpu.pipeline_mode<synchronous>, transform_indices = @transform_2, window_bounds = array<i64: 96, 1>}, {pipeline_mode = #tpu.pipeline_mode<synchronous>, transform_indices = @transform_3, window_bounds = array<i64: 1, 128>}, {pipeline_mode = #tpu.pipeline_mode<synchronous>, transform_indices = @transform_4, window_bounds = array<i64: 4, 8, 128>}, {transform_indices = @transform_5, window_bounds = array<i64: 1, 32, 128>}]} {
    %c0 = arith.constant 0 : index
    %c0_0 = arith.constant 0 : index
    %0 = vector.load %arg2[%c0, %c0_0] : memref<96x32xf32, #tpu.memory_space<vmem>>, vector<96x32xf32>
    %c0_1 = arith.constant 0 : index
    %c0_2 = arith.constant 0 : index
    %c0_3 = arith.constant 0 : index
    %1 = vector.load %arg1[%c0_1, %c0_2, %c0_3] : memref<1x32x128xf32, #tpu.memory_space<vmem>>, vector<1x32x128xf32>
    %2 = vector.shape_cast %1 : vector<1x32x128xf32> to vector<32x128xf32>
    %cst = arith.constant dense<0.000000e+00> : vector<96x128xf32>
    %3 = tpu.matmul %0, %2, %cst {dimension_numbers = #tpu.dot_dimension_numbers<[1], [0], [0], [1], [0, 0, 1, 1], [], []>} : vector<96x32xf32>, vector<32x128xf32>, vector<96x128xf32> -> vector<96x128xf32>
    %c0_4 = arith.constant 0 : index
    %c0_5 = arith.constant 0 : index
    %4 = vector.load %arg3[%c0_4, %c0_5] : memref<96x1xf32, #tpu.memory_space<vmem>>, vector<96x1xf32>
    %5 = vector.broadcast %4 : vector<96x1xf32> to vector<96x128xf32>
    %6 = arith.addf %3, %5 : vector<96x128xf32>
    %7 = vector.extract_strided_slice %6 {offsets = [0, 0], sizes = [32, 128], strides = [1, 1]} : vector<96x128xf32> to vector<32x128xf32>
    %8 = vector.shape_cast %7 : vector<32x128xf32> to vector<4x8x128xf32>
    %9 = vector.extract_strided_slice %6 {offsets = [32, 0], sizes = [32, 128], strides = [1, 1]} : vector<96x128xf32> to vector<32x128xf32>
    %10 = vector.shape_cast %9 : vector<32x128xf32> to vector<4x8x128xf32>
    %11 = vector.extract_strided_slice %6 {offsets = [64, 0], sizes = [32, 128], strides = [1, 1]} : vector<96x128xf32> to vector<32x128xf32>
    %12 = vector.shape_cast %11 : vector<32x128xf32> to vector<4x8x128xf32>
    "tpu.trace_start"() <{level = 10 : i32, message = "hdn,hdm->hnm"}> : () -> ()
    %cst_6 = arith.constant dense<0.000000e+00> : vector<4x128x128xf32>
    %13 = tpu.matmul %8, %10, %cst_6 {dimension_numbers = #tpu.dot_dimension_numbers<[1], [1], [2], [2], [0, 0, 0, 2, 1, 2], [0], [0]>} : vector<4x8x128xf32>, vector<4x8x128xf32>, vector<4x128x128xf32> -> vector<4x128x128xf32>
    "tpu.trace_stop"() : () -> ()
    %c0_7 = arith.constant 0 : index
    %c0_8 = arith.constant 0 : index
    %c0_9 = arith.constant 0 : index
    %14 = vector.load %arg5[%c0_7, %c0_8, %c0_9] : memref<4x8x128xf32, #tpu.memory_space<vmem>>, vector<4x8x128xf32>
    "tpu.trace_start"() <{level = 10 : i32, message = "hdn,hdm->hnm"}> : () -> ()
    %cst_10 = arith.constant dense<0.000000e+00> : vector<4x128x128xf32>
    %15 = tpu.matmul %14, %8, %cst_10 {dimension_numbers = #tpu.dot_dimension_numbers<[1], [1], [2], [2], [0, 0, 0, 2, 1, 2], [0], [0]>} : vector<4x8x128xf32>, vector<4x8x128xf32>, vector<4x128x128xf32> -> vector<4x128x128xf32>
    "tpu.trace_stop"() : () -> ()
    %16 = arith.addf %13, %15 : vector<4x128x128xf32>
    %c0_11 = arith.constant 0 : index
    %c0_12 = arith.constant 0 : index
    %17 = vector.load %arg4[%c0_11, %c0_12] : memref<1x128xf32, #tpu.memory_space<vmem>>, vector<1x128xf32>
    %18 = vector.shape_cast %17 : vector<1x128xf32> to vector<1x1x128xf32>
    %19 = vector.broadcast %18 : vector<1x1x128xf32> to vector<4x128x128xf32>
    %20 = arith.addf %16, %19 : vector<4x128x128xf32>
    %cst_13 = arith.constant dense<0xFF800000> : vector<4x128xf32>
    %21 = vector.multi_reduction <maximumf>, %20, %cst_13 [2] : vector<4x128x128xf32> to vector<4x128xf32>
    %22 = vector.shape_cast %21 : vector<4x128xf32> to vector<4x128x1xf32>
    %23 = vector.broadcast %22 : vector<4x128x1xf32> to vector<4x128x128xf32>
    %24 = arith.subf %20, %23 : vector<4x128x128xf32>
    %25 = math.exp %24 : vector<4x128x128xf32>
    %cst_14 = arith.constant dense<0.000000e+00> : vector<4x128xf32>
    %26 = vector.multi_reduction <add>, %25, %cst_14 [2] : vector<4x128x128xf32> to vector<4x128xf32>
    %27 = vector.shape_cast %26 : vector<4x128xf32> to vector<4x128x1xf32>
    %28 = vector.broadcast %27 : vector<4x128x1xf32> to vector<4x128x128xf32>
    %29 = arith.divf %25, %28 : vector<4x128x128xf32>
    "tpu.trace_start"() <{level = 10 : i32, message = "hdm,hnm->hdn"}> : () -> ()
    %cst_15 = arith.constant dense<0.000000e+00> : vector<4x8x128xf32>
    %30 = tpu.matmul %12, %29, %cst_15 {dimension_numbers = #tpu.dot_dimension_numbers<[2], [2], [1], [1], [0, 0, 0, 1, 1, 1], [0], [0]>} : vector<4x8x128xf32>, vector<4x128x128xf32>, vector<4x8x128xf32> -> vector<4x8x128xf32>
    "tpu.trace_stop"() : () -> ()
    %31 = vector.shape_cast %30 : vector<4x8x128xf32> to vector<32x128xf32>
    %c0_16 = arith.constant 0 : index
    %c0_17 = arith.constant 0 : index
    %c0_18 = arith.constant 0 : index
    %32 = vector.load %arg6[%c0_16, %c0_17, %c0_18] : memref<1x32x128xf32, #tpu.memory_space<vmem>>, vector<1x32x128xf32>
    %33 = vector.shape_cast %32 : vector<1x32x128xf32> to vector<32x128xf32>
    %34 = vector.shape_cast %31 : vector<32x128xf32> to vector<1x32x128xf32>
    tpu.vector_store %arg6[%c0_16, %c0_17, %c0_18], %34 {strides = array<i32>} : memref<1x32x128xf32, #tpu.memory_space<vmem>>, vector<1x32x128xf32>,
    return
  }
  func.func @transform_0(%arg0: i32) -> (i32, i32, i32) {
    %c0_i32 = arith.constant 0 : i32
    %c0_i32_0 = arith.constant 0 : i32
    %c0_i32_1 = arith.constant 0 : i32
    return %arg0, %c0_i32, %c0_i32_0 : i32, i32, i32
  }
  func.func @transform_1(%arg0: i32) -> (i32, i32) {
    %c0_i32 = arith.constant 0 : i32
    %c0_i32_0 = arith.constant 0 : i32
    %c0_i32_1 = arith.constant 0 : i32
    return %c0_i32, %c0_i32_0 : i32, i32
  }
  func.func @transform_2(%arg0: i32) -> (i32, i32) {
    %c0_i32 = arith.constant 0 : i32
    %c0_i32_0 = arith.constant 0 : i32
    %c0_i32_1 = arith.constant 0 : i32
    return %c0_i32, %c0_i32_0 : i32, i32
  }
  func.func @transform_3(%arg0: i32) -> (i32, i32) {
    %c0_i32 = arith.constant 0 : i32
    %c0_i32_0 = arith.constant 0 : i32
    %c0_i32_1 = arith.constant 0 : i32
    return %c0_i32, %c0_i32_0 : i32, i32
  }
  func.func @transform_4(%arg0: i32) -> (i32, i32, i32) {
    %c0_i32 = arith.constant 0 : i32
    %c0_i32_0 = arith.constant 0 : i32
    %c0_i32_1 = arith.constant 0 : i32
    %c0_i32_2 = arith.constant 0 : i32
    return %c0_i32, %c0_i32_0, %c0_i32_1 : i32, i32, i32
  }
  func.func @transform_5(%arg0: i32) -> (i32, i32, i32) {
    %c0_i32 = arith.constant 0 : i32
    %c0_i32_0 = arith.constant 0 : i32
    %c0_i32_1 = arith.constant 0 : i32
    return %arg0, %c0_i32, %c0_i32_0 : i32, i32, i32
  }
}

</mosaic_0001>

<bundles_post_ra>
// kernel: tpu_custom_call.1
= control target key start
LH: loop header
LB: loop body
LE: loop exit
PB: predicated region body
PF: predicated region fallthrough
CT: control target
= control target key end

     0   :  { %10 = vsyncpa [#allocation3], 0  ;;  %s5701_s0 = inlined_call_operand.vmem [shape: f32[2,32,128], index: 0, kind: input, shape index: {}]   ;;  %s5702_s1 = inlined_call_operand.vmem [shape: f32[96,32], index: 1, kind: input, shape index: {}]   ;;  %s5703_s2 = inlined_call_operand.vmem [shape: f32[96,1], index: 2, kind: input, shape index: {}]   ;;  %s5704_s3 = inlined_call_operand.vmem [shape: f32[1,128], index: 3, kind: input, shape index: {}]   ;;  %s5705_s4 = inlined_call_operand.vmem [shape: f32[4,8,128], index: 4, kind: input, shape index: {}]   ;;  %s5706_s5 = inlined_call_operand.hbm [shape: f32[2,32,128], index: 5, kind: output, shape index: {}]  }
   0x1   :  { %12 = vsyncpa [#allocation3 + $0x1], 0  ;;  %s4610_s18 = smov 0   ;;  %s4612_s19 = smov 0  }
   0x2   :  { %s4614_s20 = smov 0   ;;  %s4616_s21 = smov 0  }
   0x3 LB: > { %s4631_s22 = sadd.s32 4294967295, %s4571_s21   ;;  %s3285_s23 = sadd.s32 4294967294, %s4571_s21   ;;  %s4571_s21 = sphi %s4616_s21, %s5839_s21   ;;  %s4567_s20 = sphi %s4614_s20, %s5838_s20   ;;  %s4563_s19 = sphi %s4612_s19, %s5837_s19   ;;  %s4559_s18 = sphi %s4610_s18, %s5836_s18  }
   0x4   : > { %s4635_s24 = sadd.s32 1, %s4571_s21   ;;  %s135_s25 = sadd.s32 1, %s4567_s20 }
   0x5   : > { %s132_s26 = ssub.s32 %s4571_s21, %s4635_s24  ;;  %p145_p0 = scmp.ne.s32.totalorder %s4567_s20, %s4563_s19 }
   0x6   : > { %p133_p1 = scmp.eq.s32.totalorder %s132_s26, 0  ;;  %p146_p2 = scmp.eq.s32.totalorder %s4631_s22, 1 }
   0x7   : > { %p151_p3 = scmp.ne.s32.totalorder %s4563_s19, %s4559_s18  ;;  %p152_p4 = scmp.eq.s32.totalorder %s3285_s23, 1 }
   0x8   : > { %s4646_s27 = scalar_select %p133_p1, %s4567_s20, %s135_s25  }
   0x9   : > { %p4648_p5 = por %p146_p2, %p145_p0  ;;  %p4652_p6 = por %p152_p4, %p151_p3 }
   0xa   : > { %p3288_p7 = scmp.ge.s32.totalorder %s4571_s21, 1  ;;  %p190_p8 = scmp.lt.s32.totalorder %s4571_s21, 3 }
   0xc   : > { %p191_p9 = pnand %p3288_p7, %p190_p8 }
   0xe   : > { %194 = sbr.rel (%p191_p9) target bundleno = 1358 (0x54e), region = 40 }
  0x15   : > { %p218_p10 = scmp.lt.s32.totalorder %s4631_s22, 1  ;;  %v223_v0 = vld [vmem:[%s5702_s1] sm:$0xff]  ;;  %vm311_vm0 = vcmask 261120   ;;  %v229_v1 = vld [vmem:[%s5702_s1 + $0x30] sm:$0xff]  ;;  %v4573_v3 = vmov 0   ;;  %v242_v5 = vld [vmem:[%s5703_s2 + $0x18] sm:$0xff] }
  0x16   : > { %3668 = vmatprep.mubr.msk.f32.mxu0 %vm311_vm0, %v223_v0  ;;  %3677 = vmatprep.mubr.msk.f32.mxu1 %vm311_vm0, %v229_v1  ;;  %v241_v2 = vld [vmem:[%s5703_s2 + $0x10] sm:$0xff]  ;;  %v239_v4 = vld [vmem:[%s5703_s2] sm:$0xff]  ;;  %v240_v6 = vld [vmem:[%s5703_s2 + $0x8] sm:$0xff]  ;;  %vm509_vm1 = vcmask 64512   ;;  %vm4575_vm2 = vmmov 0   ;;  %s215_s26 = sand.u32 1, %s4563_s19  }
  0x17   : > { %s219_s11 = scalar_select %p218_p10, %s4631_s22, 1  ;;  %4252 = vset.pattern.permute.xlu1 %v4573_v3  ;;  %4251 = vset.pattern.permute.xlu0 %v4573_v3  ;;  %v244_v13 = vld [vmem:[%s5703_s2 + $0x28] sm:$0xff]  ;;  %v243_v14 = vld [vmem:[%s5703_s2 + $0x20] sm:$0xff]  ;;  %v245_v15 = vld [vmem:[%s5703_s2 + $0x30] sm:$0xff] }
  0x18   : > { %263 = vperm.xlu1 %4252, %v241_v2   ;;  %253 = vperm.xlu0 %4251, %v239_v4   ;;  %v224_v16 = vld [vmem:[%s5702_s1 + $0x8] sm:$0xff]  ;;  %v230_v17 = vld [vmem:[%s5702_s1 + $0x38] sm:$0xff]  ;;  %v225_v18 = vld [vmem:[%s5702_s1 + $0x10] sm:$0xff]  ;;  %s3289_s30 = sshll.u32 %s215_s26, 5  ;;  %s3439_s8 = sshll.u32 %s4631_s22, 9 }
  0x19   : > { %s3438_s14 = sshll.u32 %s219_s11, 5  ;;  %v226_v19 = vld [vmem:[%s5702_s1 + $0x18] sm:$0xff]  ;;  %v227_v20 = vld [vmem:[%s5702_s1 + $0x20] sm:$0xff]  ;;  %v228_v21 = vld [vmem:[%s5702_s1 + $0x28] sm:$0xff]  ;;  %s217_s6 = scalar_lea.vmem [#allocation2], %s3289_s30 }
  0x1a   : > { %s222_s25 = scalar_lea.vmem %s5701_s0, %s3438_s14  ;;  %v473_v22 = vld [vmem:[%s5705_s4] sm:$0xff]  ;;  %v474_v23 = vld [vmem:[%s5705_s4 + $0x8] sm:$0xff]  ;;  %v233_v26 = vld [vmem:[%s5702_s1 + $0x50] sm:$0xff]  ;;  %s3223_s7 = sshll.u32 %s217_s6, 4  ;;  %s5653_s7 = int_to_ptr.vmem [resolvable:$true] %s3223_s7 }
  0x1b   : > { %v235_v7 = vld [vmem:[%s222_s25] sm:$0xff]  ;;  %v236_v8 = vld [vmem:[%s222_s25 + $0x8] sm:$0xff]  ;;  %v237_v9 = vld [vmem:[%s222_s25 + $0x10] sm:$0xff]  ;;  %s5658_s11 = scalar_lea.hbm %s5706_s5, %s3439_s8  ;;  %s5660_s12 = scalar_lea.sflag [#allocation3], %s215_s26 }
  0x1c   : > { %v4034_v10 = vpack.c.bf16 %v236_v8, %v235_v7  ;;  %v238_v11 = vld [vmem:[%s222_s25 + $0x18] sm:$0xff]  ;;  %268 = vperm.xlu1 %4252, %v242_v5   ;;  %258 = vperm.xlu0 %4251, %v240_v6   ;;  %v231_v24 = vld [vmem:[%s5702_s1 + $0x40] sm:$0xff]  ;;  %v232_v25 = vld [vmem:[%s5702_s1 + $0x48] sm:$0xff]  ;;  %s4509_s13 = scalar_lea.vmem %s5653_s7, 512  ;;  %s4577_s22 = smov [#allocation2]  }
  0x1d   : > { %v4038_v12 = vpack.c.bf16 %v238_v11, %v237_v9  ;;  %v234_v27 = vld [vmem:[%s5702_s1 + $0x58] sm:$0xff]  ;;  %v475_v28 = vld [vmem:[%s5705_s4 + $0x10] sm:$0xff]  ;;  %p4510_p11 = scmp.ne.s32.totalorder %s5653_s7, %s4509_s13  ;;  %s4513_s14 = sshll.u32 %s4577_s22, 4  ;;  %s4514_s14 = int_to_ptr.vmem [resolvable:$false] %s4513_s14 }
  0x1e   : > { %4035 = vmatprep.subr.bf16.mxu0 %v4034_v10  ;;  %4138 = vmatprep.subr.bf16.mxu1 %v4034_v10  ;;  %v476_v29 = vld [vmem:[%s5705_s4 + $0x18] sm:$0xff]  ;;  %s4515_s15 = scalar_lea.vmem %s4514_s14, 1024  ;;  %p4516_p0 = scmp.lt.s32.totalorder %s5653_s7, %s4514_s14 }
  0x1f   : > { %4037 = vmatpush3.bf16.msra.mxu0 %v4034_v10  ;;  %4140 = vmatpush3.bf16.msra.mxu1 %v4034_v10  ;;  %p4511_p12 = pnand %p4510_p11, %p4648_p5  ;;  %p4517_p1 = scmp.lt.s32.totalorder %s4515_s15, %s4509_s13 }
  0x20   : > { %4039 = vmatprep.subr.bf16.mxu0 %v4038_v12  ;;  %4139 = vmatprep.subr.bf16.mxu1 %v4038_v12 }
  0x21   : > { %278 = vperm.xlu1 %4252, %v244_v13   ;;  %273 = vperm.xlu0 %4251, %v243_v14   ;;  %p4512_p13 = pneg %p4511_p12  ;;  %p4518_p2 = por %p4517_p1, %p4516_p0 }
  0x23   : > { %4041 = vmatpush3.bf16.msra.mxu0 %v4038_v12  ;;  %4141 = vmatpush3.bf16.msra.mxu1 %v4038_v12  ;;  %p4519_p3 = pnand %p4518_p2, %p4512_p13 }
  0x25   : > { %283 = vperm.xlu0 %4251, %v245_v15  }
  0x26   : > { %3669 = vmatmul.mubr.msk.f32.vlgmr.msra.gmra.mrb[0].mxu0 %vm311_vm0, %v224_v16  ;;  %3678 = vmatmul.mubr.msk.f32.vlgmr.msra.gmra.mrb[0].mxu1 %vm311_vm0, %v230_v17 }
  0x27   : > { %3671 = vmatprep.mubr.msk.f32.mxu0 %vm311_vm0, %v225_v18  ;;  %3680 = vmatprep.mubr.msk.f32.mxu1 %vm311_vm0, %v231_v24 }
  0x2a   : > { %3672 = vmatmul.mubr.msk.f32.gmra.mrb[2].mxu0 %vm311_vm0, %v226_v19  ;;  %3681 = vmatmul.mubr.msk.f32.gmra.mrb[2].mxu1 %vm311_vm0, %v232_v25 }
  0x2b   : > { %3674 = vmatprep.mubr.msk.f32.mxu0 %vm311_vm0, %v227_v20  ;;  %3683 = vmatprep.mubr.msk.f32.mxu1 %vm311_vm0, %v233_v26 }
  0x2e   : > { %3675 = vmatmul.mubr.msk.f32.gmra.mrb[4].mxu0 %vm311_vm0, %v228_v21  ;;  %3684 = vmatmul.mubr.msk.f32.gmra.mrb[4].mxu1 %vm311_vm0, %v234_v27 }
  0x43   : > { %477 = vxpose.xlu0.b32.start.end [1/1] (short) %v473_v22, 128 }
  0x4a   : > { %703 = vxpose.xlu1.b32.start.end [1/1] (short) %v474_v23, 128 }
  0x80   : > { %928 = vxpose.xlu0.b32.start.end [1/1] (short) %v475_v28, 128 }
  0x87   : > { %1153 = vxpose.xlu1.b32.start.end [1/1] (short) %v476_v29, 128 }
  0x97   : > { %v254_v30 = vpop.permute.xlu0 %253  ;;  %v264_v33 = vpop.permute.xlu1 %263 }
  0x9b   : > { %v259_v31 = vpop.permute.xlu0 %258  ;;  %v269_v35 = vpop.permute.xlu1 %268 }
  0xa0   : > { %v4744_v32 = vpop.permute.xlu0 %273  ;;  %v279_v37 = vpop.permute.xlu1 %278 }
  0xa4   : > { %v284_v34 = vpop.permute.xlu0 %283 }
  0xc3   : > { %v493_v36 = vpop.trf.xlu0 }
  0xc4   : > { %3688 = vmatprep.mubr.msk.f32.mxu1 %vm509_vm1, %v493_v36 }
  0xc7   : > { %v494_v38 = vpop.trf.xlu0 }
  0xca   : > { %v719_v39 = vpop.trf.xlu1 }
  0xcb   : > { %v495_v40 = vpop.trf.xlu0  ;;  %3714 = vmatprep.mubr.msk.f32.mxu0 %vm509_vm1, %v719_v39 }
  0xce   : > { %v720_v41 = vpop.trf.xlu1 }
  0xcf   : > { %v496_v42 = vpop.trf.xlu0 }
  0xd2   : > { %v721_v43 = vpop.trf.xlu1 }
  0xd3   : > { %v497_v44 = vpop.trf.xlu0 }
  0xd6   : > { %v722_v45 = vpop.trf.xlu1 }
  0xd7   : > { %v498_v46 = vpop.trf.xlu0 }
  0xda   : > { %v723_v47 = vpop.trf.xlu1 }
  0xdb   : > { %v499_v48 = vpop.trf.xlu0 }
  0xde   : > { %v724_v49 = vpop.trf.xlu1 }
  0xdf   : > { %v4748_v50 = vpop.trf.xlu0 }
  0xe2   : > { %v725_v51 = vpop.trf.xlu1 }
  0xe3   : > { %v4750_v52 = vpop.trf.xlu0 }
  0xe6   : > { %v726_v53 = vpop.trf.xlu1 }
  0xe7   : > { %v4752_v54 = vpop.trf.xlu0 }
  0xea   : > { %v727_v55 = vpop.trf.xlu1 }
  0xeb   : > { %v4754_v56 = vpop.trf.xlu0 }
  0xee   : > { %v728_v57 = vpop.trf.xlu1 }
  0xef   : > { %v4756_v58 = vpop.trf.xlu0 }
  0xf2   : > { %v729_v59 = vpop.trf.xlu1 }
  0xf3   : > { %v4758_v60 = vpop.trf.xlu0 }
  0xf6   : > { %v730_v61 = vpop.trf.xlu1 }
  0xf7   : > { %v4760_v62 = vpop.trf.xlu0 }
  0xf9   : > { %v3670_v63 = vpop.f32.mrb[0].mxu0  ;;  %v4762_v0 = vpop.f32.mrb[0].mxu1 }
  0xfa   : > { %v420_v1 = vadd.f32 %v3670_v63, %v259_v31  ;;  %v414_v2 = vpop.f32.mrb[1].mxu0  ;;  %v444_v3 = vpop.f32.mrb[1].mxu1 }
  0xfb   : > { %v415_v4 = vadd.f32 %v414_v2, %v254_v30  ;;  %v4764_v5 = vadd.f32 %v444_v3, %v284_v34  ;;  %v731_v6 = vpop.trf.xlu1  ;;  %v507_v7 = vpop.trf.xlu0 }
  0xfc   : > { %1603 = vxpose.xlu1.b32.start.end [1/1] (short) %v420_v1, 128  ;;  %3712 = vmatprep.subr.mxu0 %v420_v1 }
  0xfd   : > { %v3673_v8 = vpop.f32.mrb[2].mxu0  ;;  %3713 = vmatpush3.msra.mxu0 %v420_v1  ;;  %1378 = vxpose.xlu0.b32.start.end [1/1] (short) %v415_v4, 128 }
  0xfe   : > { %v4766_v9 = vadd.f32 %v3673_v8, %v269_v35  ;;  %3686 = vmatprep.subr.mxu1 %v415_v4  ;;  %v424_v10 = vpop.f32.mrb[3].mxu0  ;;  %3715 = vmatmul.mubr.msk.f32.vlgmr.msra.gmra.mrb[6].mxu0 %vm509_vm1, %v720_v41 }
  0xff   : > { %v4769_v11 = vadd.f32 %v424_v10, %v264_v33  ;;  %3687 = vmatpush3.msra.mxu1 %v415_v4  ;;  %3717 = vmatprep.mubr.msk.f32.mxu0 %vm509_vm1, %v721_v43  ;;  %v732_v12 = vpop.trf.xlu1  ;;  %v508_v13 = vpop.trf.xlu0 }
 0x100   : > { %3689 = vmatmul.mubr.msk.f32.vlgmr.msra.gmra.mrb[6].mxu1 %vm509_vm1, %v494_v38  ;;  %3764 = vmatprep.subr.mxu0 %v4766_v9 }
 0x101   : > { %v3676_v14 = vpop.f32.mrb[4].mxu0  ;;  %3738 = vmatprep.subr.mxu1 %v4769_v11  ;;  %3765 = vmatpush3.msra.mxu0 %v4766_v9 }
 0x102   : > { %v440_v15 = vadd.f32 %v3676_v14, %v279_v37  ;;  %v434_v16 = vpop.f32.mrb[5].mxu0  ;;  %3691 = vmatprep.mubr.msk.f32.mxu1 %vm509_vm1, %v495_v40  ;;  %3718 = vmatmul.mubr.msk.f32.gmra.mrb[8].mxu0 %vm509_vm1, %v722_v45 }
 0x103   : > { %v435_v17 = vadd.f32 %v434_v16, %v4744_v32  ;;  %3739 = vmatpush3.msra.mxu1 %v4769_v11  ;;  %3720 = vmatprep.mubr.msk.f32.mxu0 %vm509_vm1, %v723_v47  ;;  %v733_v18 = vpop.trf.xlu1  ;;  %v944_v19 = vpop.trf.xlu0 }
 0x104   : > { %3692 = vmatmul.mubr.msk.f32.gmra.mrb[8].mxu1 %vm509_vm1, %v496_v42  ;;  %3816 = vmatprep.subr.mxu0 %v440_v15 }
 0x105   : > { %3790 = vmatprep.subr.mxu1 %v435_v17  ;;  %3694 = vmatprep.mubr.msk.f32.mxu1 %vm509_vm1, %v497_v44 }
 0x106   : > { %3721 = vmatmul.mubr.msk.f32.gmra.mrb[10].mxu0 %vm509_vm1, %v724_v49 }
 0x107   : > { %3723 = vmatprep.mubr.msk.f32.mxu0 %vm509_vm1, %v725_v51  ;;  %v734_v20 = vpop.trf.xlu1  ;;  %v945_v21 = vpop.trf.xlu0 }
 0x108   : > { %3695 = vmatmul.mubr.msk.f32.gmra.mrb[10].mxu1 %vm509_vm1, %v498_v46 }
 0x109   : > { %3697 = vmatprep.mubr.msk.f32.mxu1 %vm509_vm1, %v499_v48 }
 0x10a   : > { %3724 = vmatmul.mubr.msk.f32.gmra.mrb[12].mxu0 %vm509_vm1, %v726_v53 }
 0x10b   : > { %3726 = vmatprep.mubr.msk.f32.mxu0 %vm509_vm1, %v727_v55  ;;  %v1169_v22 = vpop.trf.xlu1  ;;  %v946_v23 = vpop.trf.xlu0 }
 0x10c   : > { %3698 = vmatmul.mubr.msk.f32.gmra.mrb[12].mxu1 %vm509_vm1, %v4748_v50 }
 0x10d   : > { %3700 = vmatprep.mubr.msk.f32.mxu1 %vm509_vm1, %v4750_v52  ;;  %v246_v52 = vld [vmem:[%s5703_s2 + $0x38] sm:$0xff] }
 0x10e   : > { %3727 = vmatmul.mubr.msk.f32.gmra.mrb[14].mxu0 %vm509_vm1, %v728_v57 }
 0x10f   : > { %3729 = vmatprep.mubr.msk.f32.mxu0 %vm509_vm1, %v729_v59  ;;  %v1170_v24 = vpop.trf.xlu1  ;;  %v947_v25 = vpop.trf.xlu0 }
 0x110   : > { %3701 = vmatmul.mubr.msk.f32.gmra.mrb[14].mxu1 %vm509_vm1, %v4752_v54 }
 0x111   : > { %3703 = vmatprep.mubr.msk.f32.mxu1 %vm509_vm1, %v4754_v56 }
 0x112   : > { %3730 = vmatmul.mubr.msk.f32.gmra.mrb[16].mxu0 %vm509_vm1, %v730_v61 }
 0x113   : > { %3732 = vmatprep.mubr.msk.f32.mxu0 %vm509_vm1, %v731_v6  ;;  %v1171_v26 = vpop.trf.xlu1  ;;  %v948_v27 = vpop.trf.xlu0 }
 0x114   : > { %3704 = vmatmul.mubr.msk.f32.gmra.mrb[16].mxu1 %vm509_vm1, %v4756_v58 }
 0x115   : > { %3706 = vmatprep.mubr.msk.f32.mxu1 %vm509_vm1, %v4758_v60 }
 0x116   : > { %3733 = vmatmul.mubr.msk.f32.gmra.mrb[18].mxu0 %vm509_vm1, %v732_v12 }
 0x117   : > { %3735 = vmatprep.mubr.msk.f32.mxu0 %vm509_vm1, %v733_v18  ;;  %v1172_v28 = vpop.trf.xlu1  ;;  %v949_v29 = vpop.trf.xlu0 }
 0x118   : > { %3707 = vmatmul.mubr.msk.f32.gmra.mrb[18].mxu1 %vm509_vm1, %v4760_v62 }
 0x119   : > { %3709 = vmatprep.mubr.msk.f32.mxu1 %vm509_vm1, %v507_v7 }
 0x11a   : > { %3736 = vmatmul.mubr.msk.f32.gmra.mrb[20].mxu0 %vm509_vm1, %v734_v20 }
 0x11b   : > { %3766 = vmatprep.mubr.msk.f32.mxu0 %vm509_vm1, %v1169_v22  ;;  %v1173_v30 = vpop.trf.xlu1  ;;  %v950_v31 = vpop.trf.xlu0 }
 0x11c   : > { %3710 = vmatmul.mubr.msk.f32.gmra.mrb[20].mxu1 %vm509_vm1, %v508_v13  ;;  %v4883_v22 = vpop.f32.mrb[2].mxu1 }
 0x11d   : > { %3740 = vmatprep.mubr.msk.f32.mxu1 %vm509_vm1, %v944_v19  ;;  %5750 = vst [vmem:[#allocation5_spill] sm:$0xff] %v4883_v22 }
 0x11e   : > { %3767 = vmatmul.mubr.msk.f32.vlgmr.msra.gmra.mrb[22].mxu0 %vm509_vm1, %v1170_v24  ;;  %v4885_v24 = vpop.f32.mrb[3].mxu1 }
 0x11f   : > { %3817 = vmatpush3.msra.mxu0 %v440_v15  ;;  %v1174_v32 = vpop.trf.xlu1  ;;  %v951_v33 = vpop.trf.xlu0  ;;  %3769 = vmatprep.mubr.msk.f32.mxu0 %vm509_vm1, %v1171_v26  ;;  %5751 = vst [vmem:[#allocation6_spill] sm:$0xff] %v4885_v24 }
 0x120   : > { %3741 = vmatmul.mubr.msk.f32.vlgmr.msra.gmra.mrb[22].mxu1 %vm509_vm1, %v945_v21 }
 0x121   : > { %3791 = vmatpush3.msra.mxu1 %v435_v17  ;;  %3743 = vmatprep.mubr.msk.f32.mxu1 %vm509_vm1, %v946_v23 }
 0x122   : > { %3842 = vmatprep.subr.mxu1 %v4764_v5  ;;  %3770 = vmatmul.mubr.msk.f32.gmra.mrb[24].mxu0 %vm509_vm1, %v1172_v28 }
 0x123   : > { %v1175_v34 = vpop.trf.xlu1  ;;  %v952_v35 = vpop.trf.xlu0  ;;  %3772 = vmatprep.mubr.msk.f32.mxu0 %vm509_vm1, %v1173_v30 }
 0x124   : > { %3744 = vmatmul.mubr.msk.f32.gmra.mrb[24].mxu1 %vm509_vm1, %v947_v25  ;;  %v4888_v25 = vpop.f32.mrb[4].mxu1 }
 0x125   : > { %3746 = vmatprep.mubr.msk.f32.mxu1 %vm509_vm1, %v948_v27  ;;  %5752 = vst [vmem:[#allocation7_spill] sm:$0xff] %v4888_v25  ;;  %v4890_v26 = vpop.f32.mrb[5].mxu1 }
 0x126   : > { %3773 = vmatmul.mubr.msk.f32.gmra.mrb[26].mxu0 %vm509_vm1, %v1174_v32  ;;  %5753 = vst [vmem:[#allocation8_spill] sm:$0xff] %v4890_v26 }
 0x127   : > { %v1176_v36 = vpop.trf.xlu1  ;;  %v953_v37 = vpop.trf.xlu0  ;;  %3775 = vmatprep.mubr.msk.f32.mxu0 %vm509_vm1, %v1175_v34 }
 0x128   : > { %3747 = vmatmul.mubr.msk.f32.gmra.mrb[26].mxu1 %vm509_vm1, %v949_v29 }
 0x129   : > { %3749 = vmatprep.mubr.msk.f32.mxu1 %vm509_vm1, %v950_v31 }
 0x12a   : > { %3776 = vmatmul.mubr.msk.f32.gmra.mrb[28].mxu0 %vm509_vm1, %v1176_v36 }
 0x12b   : > { %v1177_v38 = vpop.trf.xlu1  ;;  %v954_v39 = vpop.trf.xlu0 }
 0x12c   : > { %3750 = vmatmul.mubr.msk.f32.gmra.mrb[28].mxu1 %vm509_vm1, %v951_v33  ;;  %3778 = vmatprep.mubr.msk.f32.mxu0 %vm509_vm1, %v1177_v38 }
 0x12d   : > { %3752 = vmatprep.mubr.msk.f32.mxu1 %vm509_vm1, %v952_v35  ;;  %v247_v35 = vld [vmem:[%s5703_s2 + $0x40] sm:$0xff] }
 0x12f   : > { %v1178_v40 = vpop.trf.xlu1  ;;  %v955_v41 = vpop.trf.xlu0 }
 0x130   : > { %3779 = vmatmul.mubr.msk.f32.gmra.mrb[30].mxu0 %vm509_vm1, %v1178_v40  ;;  %3753 = vmatmul.mubr.msk.f32.gmra.mrb[30].mxu1 %vm509_vm1, %v953_v37 }
 0x131   : > { %3755 = vmatprep.mubr.msk.f32.mxu1 %vm509_vm1, %v954_v39 }
 0x133   : > { %v1179_v42 = vpop.trf.xlu1  ;;  %v956_v43 = vpop.trf.xlu0 }
 0x134   : > { %3781 = vmatprep.mubr.msk.f32.mxu0 %vm509_vm1, %v1179_v42  ;;  %3756 = vmatmul.mubr.msk.f32.gmra.mrb[32].mxu1 %vm509_vm1, %v955_v41 }
 0x135   : > { %3758 = vmatprep.mubr.msk.f32.mxu1 %vm509_vm1, %v956_v43 }
 0x137   : > { %v1180_v44 = vpop.trf.xlu1  ;;  %v957_v45 = vpop.trf.xlu0 }
 0x138   : > { %3782 = vmatmul.mubr.msk.f32.gmra.mrb[32].mxu0 %vm509_vm1, %v1180_v44  ;;  %3759 = vmatmul.mubr.msk.f32.gmra.mrb[34].mxu1 %vm509_vm1, %v957_v45 }
 0x13a   : > { %1828 = vxpose.xlu0.b32.start.end [1/1] (short) %v4769_v11, 128 }
 0x13b   : > { %v1181_v46 = vpop.trf.xlu1  ;;  %v958_v47 = vpop.trf.xlu0 }
 0x13c   : > { %3784 = vmatprep.mubr.msk.f32.mxu0 %vm509_vm1, %v1181_v46  ;;  %3761 = vmatprep.mubr.msk.f32.mxu1 %vm509_vm1, %v958_v47 }
 0x13f   : > { %v1182_v48 = vpop.trf.xlu1  ;;  %v959_v49 = vpop.trf.xlu0 }
 0x140   : > { %3785 = vmatmul.mubr.msk.f32.gmra.mrb[34].mxu0 %vm509_vm1, %v1182_v48  ;;  %3762 = vmatmul.mubr.msk.f32.gmra.mrb[36].mxu1 %vm509_vm1, %v959_v49 }
 0x143   : > { %v1183_v50 = vpop.trf.xlu1 }
 0x144   : > { %3787 = vmatprep.mubr.msk.f32.mxu0 %vm509_vm1, %v1183_v50 }
 0x147   : > { %v1184_v51 = vpop.trf.xlu1 }
 0x148   : > { %3788 = vmatmul.mubr.msk.f32.gmra.mrb[36].mxu0 %vm509_vm1, %v1184_v51 }
 0x156   : > { %288 = vperm.xlu1 %4252, %v246_v52  }
 0x17c   : > { %v1619_v53 = vpop.trf.xlu1 }
 0x17d   : > { %v1394_v54 = vpop.trf.xlu0  ;;  %3818 = vmatprep.mubr.msk.f32.mxu0 %vm509_vm1, %v1619_v53 }
 0x17e   : > { %3792 = vmatprep.mubr.msk.f32.mxu1 %vm509_vm1, %v1394_v54 }
 0x17f   : > { %2053 = vxpose.xlu1.b32.start.end [1/1] (short) %v4766_v9, 128 }
 0x180   : > { %v1620_v55 = vpop.trf.xlu1 }
 0x181   : > { %3819 = vmatmul.mubr.msk.f32.vlgmr.msra.gmra.mrb[6].mxu0 %vm509_vm1, %v1620_v55  ;;  %v1395_v56 = vpop.trf.xlu0 }
 0x182   : > { %3793 = vmatmul.mubr.msk.f32.vlgmr.msra.gmra.mrb[6].mxu1 %vm509_vm1, %v1395_v56 }
 0x183   : > { %3843 = vmatpush3.msra.mxu1 %v4764_v5 }
 0x184   : > { %v1621_v57 = vpop.trf.xlu1 }
 0x185   : > { %v1396_v58 = vpop.trf.xlu0  ;;  %3821 = vmatprep.mubr.msk.f32.mxu0 %vm509_vm1, %v1621_v57 }
 0x186   : > { %3795 = vmatprep.mubr.msk.f32.mxu1 %vm509_vm1, %v1396_v58 }
 0x188   : > { %v1622_v59 = vpop.trf.xlu1 }
 0x189   : > { %3822 = vmatmul.mubr.msk.f32.gmra.mrb[8].mxu0 %vm509_vm1, %v1622_v59  ;;  %v1397_v60 = vpop.trf.xlu0 }
 0x18a   : > { %3796 = vmatmul.mubr.msk.f32.gmra.mrb[8].mxu1 %vm509_vm1, %v1397_v60  ;;  %v4930_v60 = vld [vmem:[%s5704_s3] ss:$0 sm:$0xff] }
 0x18c   : > { %v1623_v61 = vpop.trf.xlu1 }
 0x18d   : > { %v1398_v62 = vpop.trf.xlu0  ;;  %3824 = vmatprep.mubr.msk.f32.mxu0 %vm509_vm1, %v1623_v61 }
 0x18e   : > { %3798 = vmatprep.mubr.msk.f32.mxu1 %vm509_vm1, %v1398_v62 }
 0x190   : > { %v1624_v63 = vpop.trf.xlu1 }
 0x191   : > { %3825 = vmatmul.mubr.msk.f32.gmra.mrb[10].mxu0 %vm509_vm1, %v1624_v63  ;;  %v1399_v1 = vpop.trf.xlu0 }
 0x192   : > { %3799 = vmatmul.mubr.msk.f32.gmra.mrb[10].mxu1 %vm509_vm1, %v1399_v1 }
 0x194   : > { %v1625_v2 = vpop.trf.xlu1 }
 0x195   : > { %v1400_v3 = vpop.trf.xlu0  ;;  %3827 = vmatprep.mubr.msk.f32.mxu0 %vm509_vm1, %v1625_v2 }
 0x196   : > { %3801 = vmatprep.mubr.msk.f32.mxu1 %vm509_vm1, %v1400_v3 }
 0x198   : > { %v1626_v4 = vpop.trf.xlu1 }
 0x199   : > { %3828 = vmatmul.mubr.msk.f32.gmra.mrb[12].mxu0 %vm509_vm1, %v1626_v4  ;;  %v1401_v5 = vpop.trf.xlu0 }
 0x19a   : > { %3802 = vmatmul.mubr.msk.f32.gmra.mrb[12].mxu1 %vm509_vm1, %v1401_v5 }
 0x19c   : > { %v1627_v6 = vpop.trf.xlu1 }
 0x19d   : > { %v1402_v7 = vpop.trf.xlu0  ;;  %3830 = vmatprep.mubr.msk.f32.mxu0 %vm509_vm1, %v1627_v6 }
 0x19e   : > { %3804 = vmatprep.mubr.msk.f32.mxu1 %vm509_vm1, %v1402_v7 }
 0x1a0   : > { %v1628_v8 = vpop.trf.xlu1 }
 0x1a1   : > { %3831 = vmatmul.mubr.msk.f32.gmra.mrb[14].mxu0 %vm509_vm1, %v1628_v8  ;;  %v1403_v9 = vpop.trf.xlu0 }
 0x1a2   : > { %3805 = vmatmul.mubr.msk.f32.gmra.mrb[14].mxu1 %vm509_vm1, %v1403_v9 }
 0x1a4   : > { %v1629_v10 = vpop.trf.xlu1 }
 0x1a5   : > { %v1404_v11 = vpop.trf.xlu0  ;;  %3833 = vmatprep.mubr.msk.f32.mxu0 %vm509_vm1, %v1629_v10 }
 0x1a6   : > { %3807 = vmatprep.mubr.msk.f32.mxu1 %vm509_vm1, %v1404_v11 }
 0x1a8   : > { %v1630_v12 = vpop.trf.xlu1 }
 0x1a9   : > { %3834 = vmatmul.mubr.msk.f32.gmra.mrb[16].mxu0 %vm509_vm1, %v1630_v12  ;;  %v1405_v13 = vpop.trf.xlu0 }
 0x1aa   : > { %3808 = vmatmul.mubr.msk.f32.gmra.mrb[16].mxu1 %vm509_vm1, %v1405_v13 }
 0x1ac   : > { %v1631_v14 = vpop.trf.xlu1 }
 0x1ad   : > { %v1406_v15 = vpop.trf.xlu0  ;;  %3836 = vmatprep.mubr.msk.f32.mxu0 %vm509_vm1, %v1631_v14 }
 0x1ae   : > { %3810 = vmatprep.mubr.msk.f32.mxu1 %vm509_vm1, %v1406_v15 }
 0x1b0   : > { %v1632_v16 = vpop.trf.xlu1 }
 0x1b1   : > { %3837 = vmatmul.mubr.msk.f32.gmra.mrb[18].mxu0 %vm509_vm1, %v1632_v16  ;;  %v1407_v17 = vpop.trf.xlu0 }
 0x1b2   : > { %3811 = vmatmul.mubr.msk.f32.gmra.mrb[18].mxu1 %vm509_vm1, %v1407_v17 }
 0x1b4   : > { %v1633_v18 = vpop.trf.xlu1 }
 0x1b5   : > { %v1408_v19 = vpop.trf.xlu0  ;;  %3839 = vmatprep.mubr.msk.f32.mxu0 %vm509_vm1, %v1633_v18 }
 0x1b6   : > { %3813 = vmatprep.mubr.msk.f32.mxu1 %vm509_vm1, %v1408_v19 }
 0x1b8   : > { %v1634_v20 = vpop.trf.xlu1 }
 0x1b9   : > { %3840 = vmatmul.mubr.msk.f32.gmra.mrb[20].mxu0 %vm509_vm1, %v1634_v20  ;;  %v1409_v21 = vpop.trf.xlu0 }
 0x1ba   : > { %3814 = vmatmul.mubr.msk.f32.gmra.mrb[20].mxu1 %vm509_vm1, %v1409_v21 }
 0x1bd   : > { %v1844_v23 = vpop.trf.xlu0 }
 0x1be   : > { %3844 = vmatprep.mubr.msk.f32.mxu1 %vm509_vm1, %v1844_v23 }
 0x1c1   : > { %v1845_v27 = vpop.trf.xlu0 }
 0x1c2   : > { %3845 = vmatmul.mubr.msk.f32.vlgmr.msra.gmra.mrb[22].mxu1 %vm509_vm1, %v1845_v27 }
 0x1c5   : > { %v1846_v28 = vpop.trf.xlu0 }
 0x1c6   : > { %3847 = vmatprep.mubr.msk.f32.mxu1 %vm509_vm1, %v1846_v28 }
 0x1c9   : > { %v1847_v29 = vpop.trf.xlu0 }
 0x1ca   : > { %3848 = vmatmul.mubr.msk.f32.gmra.mrb[24].mxu1 %vm509_vm1, %v1847_v29 }
 0x1cd   : > { %v1848_v30 = vpop.trf.xlu0 }
 0x1ce   : > { %3850 = vmatprep.mubr.msk.f32.mxu1 %vm509_vm1, %v1848_v30 }
 0x1d1   : > { %v1849_v31 = vpop.trf.xlu0 }
 0x1d2   : > { %3851 = vmatmul.mubr.msk.f32.gmra.mrb[26].mxu1 %vm509_vm1, %v1849_v31 }
 0x1d5   : > { %v289_v32 = vpop.permute.xlu1 %288  ;;  %v1850_v33 = vpop.trf.xlu0 }
 0x1d6   : > { %v450_v34 = vadd.f32 %v4762_v0, %v289_v32  ;;  %3853 = vmatprep.mubr.msk.f32.mxu1 %vm509_vm1, %v1850_v33 }
 0x1d8   : > { %3868 = vmatprep.subr.mxu0 %v450_v34 }
 0x1d9   : > { %293 = vperm.xlu1 %4252, %v247_v35   ;;  %3869 = vmatpush3.msra.mxu0 %v450_v34  ;;  %v1851_v36 = vpop.trf.xlu0 }
 0x1da   : > { %3854 = vmatmul.mubr.msk.f32.gmra.mrb[28].mxu1 %vm509_vm1, %v1851_v36 }
 0x1dd   : > { %v1852_v37 = vpop.trf.xlu0 }
 0x1de   : > { %3856 = vmatprep.mubr.msk.f32.mxu1 %vm509_vm1, %v1852_v37 }
 0x1e1   : > { %v1853_v38 = vpop.trf.xlu0 }
 0x1e2   : > { %3857 = vmatmul.mubr.msk.f32.gmra.mrb[30].mxu1 %vm509_vm1, %v1853_v38 }
 0x1e5   : > { %v1854_v39 = vpop.trf.xlu0 }
 0x1e6   : > { %3859 = vmatprep.mubr.msk.f32.mxu1 %vm509_vm1, %v1854_v39 }
 0x1e9   : > { %v1855_v0 = vpop.trf.xlu0 }
 0x1ea   : > { %3860 = vmatmul.mubr.msk.f32.gmra.mrb[32].mxu1 %vm509_vm1, %v1855_v0 }
 0x1ed   : > { %v1856_v40 = vpop.trf.xlu0 }
 0x1ee   : > { %3862 = vmatprep.mubr.msk.f32.mxu1 %vm509_vm1, %v1856_v40 }
 0x1f1   : > { %v1857_v41 = vpop.trf.xlu0 }
 0x1f2   : > { %3863 = vmatmul.mubr.msk.f32.gmra.mrb[34].mxu1 %vm509_vm1, %v1857_v41 }
 0x1f5   : > { %v1858_v42 = vpop.trf.xlu0 }
 0x1f6   : > { %3865 = vmatprep.mubr.msk.f32.mxu1 %vm509_vm1, %v1858_v42 }
 0x1f9   : > { %v1859_v43 = vpop.trf.xlu0 }
 0x1fa   : > { %3866 = vmatmul.mubr.msk.f32.gmra.mrb[36].mxu1 %vm509_vm1, %v1859_v43 }
 0x1ff   : > { %v2069_v44 = vpop.trf.xlu1 }
 0x200   : > { %3870 = vmatprep.mubr.msk.f32.mxu0 %vm509_vm1, %v2069_v44 }
 0x203   : > { %v2070_v45 = vpop.trf.xlu1 }
 0x204   : > { %3871 = vmatmul.mubr.msk.f32.vlgmr.msra.gmra.mrb[22].mxu0 %vm509_vm1, %v2070_v45 }
 0x207   : > { %v2071_v46 = vpop.trf.xlu1 }
 0x208   : > { %3873 = vmatprep.mubr.msk.f32.mxu0 %vm509_vm1, %v2071_v46 }
 0x20b   : > { %v2072_v47 = vpop.trf.xlu1 }
 0x20c   : > { %3874 = vmatmul.mubr.msk.f32.gmra.mrb[24].mxu0 %vm509_vm1, %v2072_v47 }
 0x20f   : > { %v2073_v48 = vpop.trf.xlu1 }
 0x210   : > { %3876 = vmatprep.mubr.msk.f32.mxu0 %vm509_vm1, %v2073_v48 }
 0x213   : > { %v2074_v49 = vpop.trf.xlu1 }
 0x214   : > { %3877 = vmatmul.mubr.msk.f32.gmra.mrb[26].mxu0 %vm509_vm1, %v2074_v49 }
 0x217   : > { %v2075_v50 = vpop.trf.xlu1 }
 0x218   : > { %3879 = vmatprep.mubr.msk.f32.mxu0 %vm509_vm1, %v2075_v50 }
 0x21b   : > { %v2076_v51 = vpop.trf.xlu1 }
 0x21c   : > { %3880 = vmatmul.mubr.msk.f32.gmra.mrb[28].mxu0 %vm509_vm1, %v2076_v51 }
 0x21f   : > { %v2077_v52 = vpop.trf.xlu1 }
 0x220   : > { %3882 = vmatprep.mubr.msk.f32.mxu0 %vm509_vm1, %v2077_v52 }
 0x223   : > { %v2078_v53 = vpop.trf.xlu1 }
 0x224   : > { %3883 = vmatmul.mubr.msk.f32.gmra.mrb[30].mxu0 %vm509_vm1, %v2078_v53 }
 0x227   : > { %v2079_v54 = vpop.trf.xlu1 }
 0x228   : > { %3885 = vmatprep.mubr.msk.f32.mxu0 %vm509_vm1, %v2079_v54 }
 0x22b   : > { %v2080_v55 = vpop.trf.xlu1 }
 0x22c   : > { %3886 = vmatmul.mubr.msk.f32.gmra.mrb[32].mxu0 %vm509_vm1, %v2080_v55 }
 0x22f   : > { %v2081_v56 = vpop.trf.xlu1 }
 0x230   : > { %3888 = vmatprep.mubr.msk.f32.mxu0 %vm509_vm1, %v2081_v56 }
 0x233   : > { %v2082_v57 = vpop.trf.xlu1 }
 0x234   : > { %3889 = vmatmul.mubr.msk.f32.gmra.mrb[34].mxu0 %vm509_vm1, %v2082_v57 }
 0x237   : > { %v2083_v58 = vpop.trf.xlu1 }
 0x238   : > { %3891 = vmatprep.mubr.msk.f32.mxu0 %vm509_vm1, %v2083_v58 }
 0x23b   : > { %v2084_v59 = vpop.trf.xlu1 }
 0x23c   : > { %3892 = vmatmul.mubr.msk.f32.gmra.mrb[36].mxu0 %vm509_vm1, %v2084_v59 }
 0x254   : > { %v3820_v61 = vpop.f32.mrb[6].mxu0 }
 0x255   : > { %v4933_v62 = vadd.f32 %v3820_v61, %v4930_v60  ;;  %v3794_v63 = vpop.f32.mrb[6].mxu1  ;;  %v1749_v1 = vpop.f32.mrb[7].mxu0 }
 0x256   : > { %v4936_v2 = vadd.f32 %v3794_v63, %v4930_v60  ;;  %v1524_v3 = vpop.f32.mrb[7].mxu1  ;;  %v4941_v4 = vadd.f32 %v4930_v60, %v1749_v1 }
 0x257   : > { %2383 = vmax.xlane.f32.xlu0 %v4933_v62  ;;  %v4945_v6 = vadd.f32 %v4930_v60, %v1524_v3 }
 0x258   : > { %2351 = vmax.xlane.f32.xlu1 %v4936_v2 }
 0x25b   : > { %2381 = vmax.xlane.f32.xlu0 %v4941_v4 }
 0x25c   : > { %v3823_v5 = vpop.f32.mrb[8].mxu0 }
 0x25d   : > { %v3797_v7 = vpop.f32.mrb[8].mxu1  ;;  %v1759_v8 = vpop.f32.mrb[9].mxu0  ;;  %v4953_v11 = vadd.f32 %v3823_v5, %v4930_v60 }
 0x25e   : > { %v4948_v9 = vadd.f32 %v4930_v60, %v1759_v8  ;;  %v1534_v10 = vpop.f32.mrb[9].mxu1  ;;  %v4961_v14 = vadd.f32 %v3797_v7, %v4930_v60 }
 0x25f   : > { %2349 = vmax.xlane.f32.xlu0 %v4945_v6  ;;  %v4956_v12 = vadd.f32 %v4930_v60, %v1534_v10 }
 0x260   : > { %2385 = vmax.xlane.f32.xlu1 %v4948_v9 }
 0x263   : > { %2387 = vmax.xlane.f32.xlu0 %v4953_v11 }
 0x264   : > { %v3826_v13 = vpop.f32.mrb[10].mxu0  ;;  %2353 = vmax.xlane.f32.xlu1 %v4956_v12 }
 0x265   : > { %v3800_v15 = vpop.f32.mrb[10].mxu1  ;;  %v1769_v16 = vpop.f32.mrb[11].mxu0  ;;  %v4969_v19 = vadd.f32 %v3826_v13, %v4930_v60 }
 0x266   : > { %v4964_v17 = vadd.f32 %v4930_v60, %v1769_v16  ;;  %v1544_v18 = vpop.f32.mrb[11].mxu1  ;;  %v4977_v23 = vadd.f32 %v3800_v15, %v4930_v60 }
 0x267   : > { %2355 = vmax.xlane.f32.xlu0 %v4961_v14  ;;  %v4972_v20 = vadd.f32 %v4930_v60, %v1544_v18 }
 0x268   : > { %2389 = vmax.xlane.f32.xlu1 %v4964_v17 }
 0x26b   : > { %2391 = vmax.xlane.f32.xlu0 %v4969_v19 }
 0x26c   : > { %v3829_v21 = vpop.f32.mrb[12].mxu0  ;;  %2357 = vmax.xlane.f32.xlu1 %v4972_v20 }
 0x26d   : > { %v3803_v27 = vpop.f32.mrb[12].mxu1  ;;  %v1779_v28 = vpop.f32.mrb[13].mxu0  ;;  %v4985_v31 = vadd.f32 %v3829_v21, %v4930_v60 }
 0x26e   : > { %v4980_v29 = vadd.f32 %v4930_v60, %v1779_v28  ;;  %v1554_v30 = vpop.f32.mrb[13].mxu1  ;;  %v4993_v34 = vadd.f32 %v3803_v27, %v4930_v60 }
 0x26f   : > { %2359 = vmax.xlane.f32.xlu0 %v4977_v23  ;;  %v4988_v32 = vadd.f32 %v4930_v60, %v1554_v30 }
 0x270   : > { %2393 = vmax.xlane.f32.xlu1 %v4980_v29 }
 0x273   : > { %2395 = vmax.xlane.f32.xlu0 %v4985_v31 }
 0x274   : > { %v3832_v33 = vpop.f32.mrb[14].mxu0  ;;  %2361 = vmax.xlane.f32.xlu1 %v4988_v32 }
 0x275   : > { %v3806_v35 = vpop.f32.mrb[14].mxu1  ;;  %v1789_v36 = vpop.f32.mrb[15].mxu0  ;;  %v5001_v39 = vadd.f32 %v3832_v33, %v4930_v60 }
 0x276   : > { %v4996_v37 = vadd.f32 %v4930_v60, %v1789_v36  ;;  %v1564_v38 = vpop.f32.mrb[15].mxu1  ;;  %v5009_v41 = vadd.f32 %v3806_v35, %v4930_v60 }
 0x277   : > { %2363 = vmax.xlane.f32.xlu0 %v4993_v34  ;;  %v5004_v0 = vadd.f32 %v4930_v60, %v1564_v38 }
 0x278   : > { %2397 = vmax.xlane.f32.xlu1 %v4996_v37 }
 0x27b   : > { %2399 = vmax.xlane.f32.xlu0 %v5001_v39 }
 0x27c   : > { %v3835_v40 = vpop.f32.mrb[16].mxu0  ;;  %2365 = vmax.xlane.f32.xlu1 %v5004_v0 }
 0x27d   : > { %v3809_v42 = vpop.f32.mrb[16].mxu1  ;;  %v1799_v43 = vpop.f32.mrb[17].mxu0  ;;  %v5017_v46 = vadd.f32 %v3835_v40, %v4930_v60 }
 0x27e   : > { %v5012_v44 = vadd.f32 %v4930_v60, %v1799_v43  ;;  %v1574_v45 = vpop.f32.mrb[17].mxu1  ;;  %v5025_v49 = vadd.f32 %v3809_v42, %v4930_v60 }
 0x27f   : > { %2367 = vmax.xlane.f32.xlu0 %v5009_v41  ;;  %v5020_v47 = vadd.f32 %v4930_v60, %v1574_v45 }
 0x280   : > { %2401 = vmax.xlane.f32.xlu1 %v5012_v44 }
 0x283   : > { %2403 = vmax.xlane.f32.xlu0 %v5017_v46 }
 0x284   : > { %v3838_v48 = vpop.f32.mrb[18].mxu0  ;;  %2369 = vmax.xlane.f32.xlu1 %v5020_v47 }
 0x285   : > { %v3812_v50 = vpop.f32.mrb[18].mxu1  ;;  %v1809_v51 = vpop.f32.mrb[19].mxu0  ;;  %v5033_v54 = vadd.f32 %v3838_v48, %v4930_v60 }
 0x286   : > { %v5028_v52 = vadd.f32 %v4930_v60, %v1809_v51  ;;  %v1584_v53 = vpop.f32.mrb[19].mxu1  ;;  %v5041_v57 = vadd.f32 %v3812_v50, %v4930_v60 }
 0x287   : > { %2371 = vmax.xlane.f32.xlu0 %v5025_v49  ;;  %v5036_v55 = vadd.f32 %v4930_v60, %v1584_v53 }
 0x288   : > { %2405 = vmax.xlane.f32.xlu1 %v5028_v52 }
 0x28b   : > { %2407 = vmax.xlane.f32.xlu0 %v5033_v54 }
 0x28c   : > { %v3841_v56 = vpop.f32.mrb[20].mxu0  ;;  %2373 = vmax.xlane.f32.xlu1 %v5036_v55 }
 0x28d   : > { %v3815_v58 = vpop.f32.mrb[20].mxu1  ;;  %v1819_v59 = vpop.f32.mrb[21].mxu0  ;;  %v5049_v1 = vadd.f32 %v3841_v56, %v4930_v60 }
 0x28e   : > { %v5044_v61 = vadd.f32 %v4930_v60, %v1819_v59  ;;  %v1594_v63 = vpop.f32.mrb[21].mxu1  ;;  %v5057_v5 = vadd.f32 %v3815_v58, %v4930_v60 }
 0x28f   : > { %2375 = vmax.xlane.f32.xlu0 %v5041_v57  ;;  %v5052_v3 = vadd.f32 %v4930_v60, %v1594_v63 }
 0x290   : > { %2409 = vmax.xlane.f32.xlu1 %v5044_v61 }
 0x293   : > { %2411 = vmax.xlane.f32.xlu0 %v5049_v1 }
 0x294   : > { %2377 = vmax.xlane.f32.xlu1 %v5052_v3 }
 0x295   : > { %v3846_v7 = vpop.f32.mrb[22].mxu1 }
 0x296   : > { %v1974_v8 = vpop.f32.mrb[23].mxu1  ;;  %v5081_v50 = vadd.f32 %v3846_v7, %v4930_v60 }
 0x297   : > { %2379 = vmax.xlane.f32.xlu0 %v5057_v5  ;;  %v5084_v51 = vadd.f32 %v4930_v60, %v1974_v8 }
 0x29d   : > { %v3849_v10 = vpop.f32.mrb[24].mxu1 }
 0x29e   : > { %v1984_v13 = vpop.f32.mrb[25].mxu1  ;;  %v5097_v63 = vadd.f32 %v3849_v10, %v4930_v60 }
 0x29f   : > { %v5100_v7 = vadd.f32 %v4930_v60, %v1984_v13 }
 0x2a5   : > { %v3852_v15 = vpop.f32.mrb[26].mxu1 }
 0x2a6   : > { %v1994_v16 = vpop.f32.mrb[27].mxu1  ;;  %v5115_v10 = vadd.f32 %v3852_v15, %v4930_v60 }
 0x2a7   : > { %v5118_v13 = vadd.f32 %v4930_v60, %v1994_v16 }
 0x2a8   : > { %5756 = vst [vmem:[#allocation11_spill] sm:$0xff] %v5115_v10 }
 0x2ad   : > { %v3855_v18 = vpop.f32.mrb[28].mxu1 }
 0x2ae   : > { %v2004_v21 = vpop.f32.mrb[29].mxu1  ;;  %v5133_v16 = vadd.f32 %v3855_v18, %v4930_v60 }
 0x2b0   : > { %5758 = vst [vmem:[#allocation13_spill] sm:$0xff] %v5133_v16 }
 0x2b5   : > { %v3858_v27 = vpop.f32.mrb[30].mxu1 }
 0x2b6   : > { %v2014_v28 = vpop.f32.mrb[31].mxu1  ;;  %v5149_v18 = vadd.f32 %v3858_v27, %v4930_v60 }
 0x2b8   : > { %5762 = vst [vmem:[#allocation17_spill] sm:$0xff] %v5149_v18 }
 0x2bd   : > { %v5060_v30 = vpop.f32.mrb[32].mxu1 }
 0x2be   : > { %v5062_v33 = vpop.f32.mrb[33].mxu1 }
 0x2c5   : > { %v5064_v35 = vpop.f32.mrb[34].mxu1 }
 0x2c6   : > { %v5066_v36 = vpop.f32.mrb[35].mxu1 }
 0x2cd   : > { %v5068_v38 = vpop.f32.mrb[36].mxu1 }
 0x2ce   : > { %v5070_v40 = vpop.f32.mrb[37].mxu1 }
 0x2d7   : > { %v3872_v42 = vpop.f32.mrb[22].mxu0 }
 0x2d8   : > { %v5073_v43 = vadd.f32 %v3872_v42, %v4930_v60  ;;  %v2199_v45 = vpop.f32.mrb[23].mxu0 }
 0x2d9   : > { %v5076_v48 = vadd.f32 %v4930_v60, %v2199_v45 }
 0x2da   : > { %2447 = vmax.xlane.f32.xlu0 %v5073_v43 }
 0x2db   : > { %2445 = vmax.xlane.f32.xlu1 %v5076_v48 }
 0x2de   : > { %2415 = vmax.xlane.f32.xlu0 %v5081_v50 }
 0x2df   : > { %v3875_v53 = vpop.f32.mrb[24].mxu0  ;;  %2413 = vmax.xlane.f32.xlu1 %v5084_v51 }
 0x2e0   : > { %v5089_v56 = vadd.f32 %v3875_v53, %v4930_v60  ;;  %v2209_v58 = vpop.f32.mrb[25].mxu0 }
 0x2e1   : > { %v5092_v59 = vadd.f32 %v4930_v60, %v2209_v58  ;;  %v5111_v58 = vpop.permute.xlu1 %293 }
 0x2e2   : > { %2451 = vmax.xlane.f32.xlu0 %v5089_v56  ;;  %5755 = vst [vmem:[#allocation10_spill] sm:$0xff] %v5111_v58  ;;  %v5136_v58 = vadd.f32 %v4930_v60, %v2004_v21  ;;  %v5152_v21 = vadd.f32 %v4930_v60, %v2014_v28  ;;  %v5168_v28 = vadd.f32 %v5060_v30, %v4930_v60 }
 0x2e3   : > { %2449 = vmax.xlane.f32.xlu1 %v5092_v59 }
 0x2e4   : > { %5759 = vst [vmem:[#allocation14_spill] sm:$0xff] %v5136_v58  ;;  %5763 = vst [vmem:[#allocation18_spill] sm:$0xff] %v5152_v21 }
 0x2e5   : > { %5766 = vst [vmem:[#allocation21_spill] sm:$0xff] %v5168_v28 }
 0x2e6   : > { %2419 = vmax.xlane.f32.xlu0 %v5097_v63 }
 0x2e7   : > { %v3878_v8 = vpop.f32.mrb[26].mxu0  ;;  %2417 = vmax.xlane.f32.xlu1 %v5100_v7 }
 0x2e8   : > { %v5105_v42 = vadd.f32 %v3878_v8, %v4930_v60  ;;  %v2219_v45 = vpop.f32.mrb[27].mxu0  ;;  %v5121_v8 = vpop.xlane.xlu1 %2351 }
 0x2e9   : > { %v5108_v53 = vadd.f32 %v4930_v60, %v2219_v45 }
 0x2ea   : > { %5754 = vst [vmem:[#allocation9_spill] sm:$0xff] %v5105_v42  ;;  %2455 = vmax.xlane.f32.xlu0 %v5105_v42 }
 0x2eb   : > { %2453 = vmax.xlane.f32.xlu1 %v5108_v53 }
 0x2ed   : > { %v2386_v15 = vpop.xlane.xlu1 %2385 }
 0x2ee   : > { %2423 = vmax.xlane.f32.xlu0 %v5115_v10 }
 0x2ef   : > { %v3881_v25 = vpop.f32.mrb[28].mxu0  ;;  %2421 = vmax.xlane.f32.xlu1 %v5118_v13 }
 0x2f0   : > { %v5125_v45 = vadd.f32 %v3881_v25, %v4930_v60  ;;  %v2229_v26 = vpop.f32.mrb[29].mxu0 }
 0x2f1   : > { %v5128_v24 = vadd.f32 %v4930_v60, %v2229_v26  ;;  %v2354_v10 = vpop.xlane.xlu1 %2353 }
 0x2f2   : > { %5757 = vst [vmem:[#allocation12_spill] sm:$0xff] %v5125_v45  ;;  %2459 = vmax.xlane.f32.xlu0 %v5125_v45 }
 0x2f3   : > { %2457 = vmax.xlane.f32.xlu1 %v5128_v24 }
 0x2f6   : > { %2427 = vmax.xlane.f32.xlu0 %v5133_v16  ;;  %v5154_v16 = vpop.xlane.xlu0 %2383 }
 0x2f7   : > { %v3884_v22 = vpop.f32.mrb[30].mxu0  ;;  %2425 = vmax.xlane.f32.xlu1 %v5136_v58 }
 0x2f8   : > { %v5141_v25 = vadd.f32 %v3884_v22, %v4930_v60  ;;  %v2239_v26 = vpop.f32.mrb[31].mxu0  ;;  %v2390_v22 = vpop.xlane.xlu1 %2389 }
 0x2f9   : > { %v5144_v45 = vadd.f32 %v4930_v60, %v2239_v26 }
 0x2fa   : > { %5760 = vst [vmem:[#allocation15_spill] sm:$0xff] %v5141_v25  ;;  %2463 = vmax.xlane.f32.xlu0 %v5141_v25  ;;  %v2382_v27 = vpop.xlane.xlu0 %2381 }
 0x2fb   : > { %5761 = vst [vmem:[#allocation16_spill] sm:$0xff] %v5144_v45  ;;  %2461 = vmax.xlane.f32.xlu1 %v5144_v45 }
 0x2fe   : > { %2431 = vmax.xlane.f32.xlu0 %v5149_v18  ;;  %v5172_v18 = vadd.f32 %v4930_v60, %v5062_v33  ;;  %v2350_v58 = vpop.xlane.xlu0 %2349 }
 0x2ff   : > { %v3887_v42 = vpop.f32.mrb[32].mxu0  ;;  %2429 = vmax.xlane.f32.xlu1 %v5152_v21  ;;  %v2358_v21 = vpop.xlane.xlu1 %2357 }
 0x300   : > { %v5159_v26 = vadd.f32 %v3887_v42, %v4930_v60  ;;  %v2249_v25 = vpop.f32.mrb[33].mxu0  ;;  %5767 = vst [vmem:[#allocation22_spill] sm:$0xff] %v5172_v18 }
 0x301   : > { %v5162_v45 = vadd.f32 %v4930_v60, %v2249_v25  ;;  %v2493_v25 = vsub.f32 %v4941_v4, %v2382_v27  ;;  %v2477_v4 = vsub.f32 %v4945_v6, %v2350_v58  ;;  %v5192_v27 = vadd.f32 %v4930_v60, %v5066_v36 }
 0x302   : > { %5764 = vst [vmem:[#allocation19_spill] sm:$0xff] %v5159_v26  ;;  %2467 = vmax.xlane.f32.xlu0 %v5159_v26  ;;  %v5207_v36 = vadd.f32 %v5068_v38, %v4930_v60  ;;  %v2497_v38 = vsub.f32 %v4964_v17, %v2390_v22 }
 0x303   : > { %5765 = vst [vmem:[#allocation20_spill] sm:$0xff] %v5162_v45  ;;  %2465 = vmax.xlane.f32.xlu1 %v5162_v45  ;;  %v2394_v33 = vpop.xlane.xlu1 %2393 }
 0x306   : > { %2435 = vmax.xlane.f32.xlu0 %v5168_v28  ;;  %v5187_v28 = vadd.f32 %v5064_v35, %v4930_v60 }
 0x307   : > { %v3890_v42 = vpop.f32.mrb[34].mxu0  ;;  %2433 = vmax.xlane.f32.xlu1 %v5172_v18  ;;  %v2573_v18 = vmul.f32 1.442695, %v2493_v25  ;;  %v2362_v25 = vpop.xlane.xlu1 %2361 }
 0x308   : > { %v5178_v26 = vadd.f32 %v3890_v42, %v4930_v60  ;;  %v2259_v45 = vpop.f32.mrb[35].mxu0  ;;  %v2541_v42 = vmul.f32 1.442695, %v2477_v4 }
 0x309   : > { %v5181_v30 = vadd.f32 %v4930_v60, %v2259_v45  ;;  %4253 = vpow2.f32 %v2573_v18  ;;  %v5214_v18 = vpop.xlane.xlu0 %2387 }
 0x30a   : > { %5768 = vst [vmem:[#allocation23_spill] sm:$0xff] %v5178_v26  ;;  %2471 = vmax.xlane.f32.xlu0 %v5178_v26  ;;  %v2495_v26 = vsub.f32 %v4948_v9, %v2386_v15  ;;  %4255 = vpow2.f32 %v2541_v42  ;;  %v2479_v9 = vsub.f32 %v4956_v12, %v2354_v10  ;;  %v5212_v15 = vadd.f32 %v4930_v60, %v5070_v40 }
 0x30b   : > { %5769 = vst [vmem:[#allocation24_spill] sm:$0xff] %v5181_v30  ;;  %2469 = vmax.xlane.f32.xlu1 %v5181_v30  ;;  %v2398_v4 = vpop.xlane.xlu1 %2397  ;;  %v2481_v12 = vsub.f32 %v4972_v20, %v2358_v21  ;;  %v2483_v20 = vsub.f32 %v4988_v32, %v2362_v25 }
 0x30c   : > { %v2577_v58 = vmul.f32 1.442695, %v2495_v26 }
 0x30d   : > { %v5221_v26 = vpop.xlane.xlu0 %2355  ;;  %v2549_v42 = vmul.f32 1.442695, %v2481_v12  ;;  %v248_v12 = vld [vmem:[%s5703_s2 + $0x48] sm:$0xff] }
 0x30e   : > { %2439 = vmax.xlane.f32.xlu0 %v5187_v28  ;;  %4257 = vpow2.f32 %v2577_v58  ;;  %v2499_v58 = vsub.f32 %v4980_v29, %v2394_v33  ;;  %v2501_v29 = vsub.f32 %v4996_v37, %v2398_v4 }
 0x30f   : > { %v3893_v45 = vpop.f32.mrb[36].mxu0  ;;  %2437 = vmax.xlane.f32.xlu1 %v5192_v27  ;;  %v2366_v40 = vpop.xlane.xlu1 %2365 }
 0x310   : > { %v5198_v30 = vadd.f32 %v3893_v45, %v4930_v60  ;;  %v2269_v35 = vpop.f32.mrb[37].mxu0  ;;  %v2545_v45 = vmul.f32 1.442695, %v2479_v9  ;;  %v2589_v32 = vmul.f32 1.442695, %v2501_v29  ;;  %v2485_v25 = vsub.f32 %v5004_v0, %v2366_v40 }
 0x311   : > { %v5201_v6 = vadd.f32 %v4930_v60, %v2269_v35  ;;  %v2581_v60 = vmul.f32 1.442695, %v2497_v38  ;;  %v5229_v17 = vpop.xlane.xlu0 %2391 }
 0x312   : > { %2475 = vmax.xlane.f32.xlu0 %v5198_v30  ;;  %4259 = vpow2.f32 %v2545_v45  ;;  %v2585_v45 = vmul.f32 1.442695, %v2499_v58  ;;  %v2557_v37 = vmul.f32 1.442695, %v2485_v25 }
 0x313   : > { %2473 = vmax.xlane.f32.xlu1 %v5201_v6  ;;  %v5219_v35 = vpop.eup %4253  ;;  %4261 = vpow2.f32 %v2581_v60  ;;  %v2402_v9 = vpop.xlane.xlu1 %2401  ;;  %v2553_v60 = vmul.f32 1.442695, %v2483_v20 }
 0x314   : > { %v5225_v10 = vpop.eup %4255  ;;  %4263 = vpow2.f32 %v2549_v42  ;;  %v2503_v4 = vsub.f32 %v5012_v44, %v2402_v9 }
 0x315   : > { %v5237_v38 = vpop.xlane.xlu0 %2359  ;;  %4265 = vpow2.f32 %v2585_v45 }
 0x316   : > { %2443 = vmax.xlane.f32.xlu0 %v5207_v36  ;;  %4267 = vpow2.f32 %v2553_v60  ;;  %v2593_v0 = vmul.f32 1.442695, %v2503_v4 }
 0x317   : > { %2441 = vmax.xlane.f32.xlu1 %v5212_v15  ;;  %v2370_v33 = vpop.xlane.xlu1 %2369  ;;  %4269 = vpow2.f32 %v2589_v32 }
 0x318   : > { %v5231_v22 = vpop.eup %4257  ;;  %4271 = vpow2.f32 %v2557_v37  ;;  %v2487_v40 = vsub.f32 %v5020_v47, %v2370_v33  ;;  %v2478_v47 = vsub.f32 %v4936_v2, %v5121_v8 }
 0x319   : > { %5770 = vst [vmem:[#allocation25_spill] sm:$0xff] %v5231_v22  ;;  %v5248_v42 = vpop.xlane.xlu0 %2395  ;;  %4273 = vpow2.f32 %v2593_v0 }
 0x31a   : > { %v2561_v44 = vmul.f32 1.442695, %v2487_v40  ;;  %v2543_v0 = vmul.f32 1.442695, %v2478_v47 }
 0x31b   : > { %2701 = vadd.xlane.f32.xlu1 %v5219_v35  ;;  %v2406_v45 = vpop.xlane.xlu1 %2405 }
 0x31c   : > { %v5235_v21 = vpop.eup %4259  ;;  %v2505_v9 = vsub.f32 %v5028_v52, %v2406_v45  ;;  %4275 = vpow2.f32 %v2561_v44  ;;  %v2496_v52 = vsub.f32 %v4953_v11, %v5214_v18 }
 0x31d   : > { %5771 = vst [vmem:[#allocation26_spill] sm:$0xff] %v5235_v21 }
 0x31e   : > { %v2597_v4 = vmul.f32 1.442695, %v2505_v9 }
 0x31f   : > { %2669 = vadd.xlane.f32.xlu1 %v5225_v10  ;;  %v2374_v60 = vpop.xlane.xlu1 %2373 }
 0x323   : > { %2705 = vadd.xlane.f32.xlu1 %v5231_v22  ;;  %v5244_v22 = vpop.eup %4261  ;;  %v2410_v33 = vpop.xlane.xlu1 %2409 }
 0x324   : > { %v5250_v58 = vpop.eup %4263  ;;  %v2507_v8 = vsub.f32 %v5044_v61, %v2410_v33  ;;  %v2498_v61 = vsub.f32 %v4969_v19, %v5229_v17 }
 0x325   : > { %v5254_v20 = vpop.eup %4265 }
 0x326   : > { %v5260_v29 = vpop.eup %4267  ;;  %v2601_v11 = vmul.f32 1.442695, %v2507_v8 }
 0x327   : > { %2673 = vadd.xlane.f32.xlu1 %v5235_v21  ;;  %v5256_v21 = vpop.xlane.xlu0 %2363  ;;  %v5268_v25 = vpop.eup %4269 }
 0x328   : > { %v2378_v40 = vpop.xlane.xlu1 %2377 }
 0x329   : > { %v2491_v18 = vsub.f32 %v5052_v3, %v2378_v40  ;;  %v2583_v3 = vmul.f32 1.442695, %v2498_v61 }
 0x32b   : > { %2709 = vadd.xlane.f32.xlu1 %v5244_v22  ;;  %v5266_v32 = vpop.xlane.xlu0 %2399  ;;  %v2569_v47 = vmul.f32 1.442695, %v2491_v18 }
 0x32c   : > { %298 = vperm.xlu0 %4251, %v248_v12   ;;  %v2494_v12 = vsub.f32 %v4933_v62, %v5154_v16  ;;  %v2489_v62 = vsub.f32 %v5036_v55, %v2374_v60  ;;  %v5274_v16 = vpop.eup %4271  ;;  %v2579_v55 = vmul.f32 1.442695, %v2496_v52  ;;  %v2480_v60 = vsub.f32 %v4961_v14, %v5221_v26 }
 0x32e   : > { %v2575_v37 = vmul.f32 1.442695, %v2494_v12  ;;  %v2565_v2 = vmul.f32 1.442695, %v2489_v62  ;;  %v5282_v12 = vpop.eup %4273 }
 0x32f   : > { %2677 = vadd.xlane.f32.xlu1 %v5250_v58  ;;  %v5278_v45 = vpop.xlane.xlu0 %2367  ;;  %v5288_v9 = vpop.eup %4275 }
 0x330   : > { %4277 = vpow2.f32 %v2575_v37  ;;  %v2547_v37 = vmul.f32 1.442695, %v2480_v60 }
 0x331   : > { %4279 = vpow2.f32 %v2597_v4  ;;  %v2482_v4 = vsub.f32 %v4977_v23, %v5237_v38  ;;  %v2484_v38 = vsub.f32 %v4993_v34, %v5256_v21  ;;  %v2486_v21 = vsub.f32 %v5009_v41, %v5278_v45 }
 0x332   : > { %4281 = vpow2.f32 %v2543_v0  ;;  %v2500_v0 = vsub.f32 %v4985_v31, %v5248_v42  ;;  %v2502_v42 = vsub.f32 %v5001_v39, %v5266_v32  ;;  %v5724_v45 = vmov 0.0|0.0  }
 0x333   : > { %2713 = vadd.xlane.f32.xlu1 %v5254_v20  ;;  %4283 = vpow2.f32 %v2565_v2  ;;  %v2404_v44 = vpop.xlane.xlu0 %2403  ;;  %v2551_v17 = vmul.f32 1.442695, %v2482_v4  ;;  %v2555_v31 = vmul.f32 1.442695, %v2484_v38  ;;  %v2559_v61 = vmul.f32 1.442695, %v2486_v21  ;;  %4066 = vmatprep.subr.bf16.mxu0 %v5724_v45 }
 0x334   : > { %4285 = vpow2.f32 %v2579_v55  ;;  %v2587_v23 = vmul.f32 1.442695, %v2500_v0  ;;  %v2591_v34 = vmul.f32 1.442695, %v2502_v42  ;;  %4042 = vmatprep.subr.bf16.mxu1 %v5724_v45 }
 0x335   : > { %4287 = vpow2.f32 %v2601_v11 }
 0x336   : > { %4289 = vpow2.f32 %v2547_v37 }
 0x337   : > { %2681 = vadd.xlane.f32.xlu1 %v5260_v29  ;;  %v2372_v26 = vpop.xlane.xlu0 %2371  ;;  %4291 = vpow2.f32 %v2569_v47  ;;  %v2504_v47 = vsub.f32 %v5017_v46, %v2404_v44 }
 0x338   : > { %4293 = vpow2.f32 %v2583_v3  ;;  %v2488_v4 = vsub.f32 %v5025_v49, %v2372_v26 }
 0x339   : > { %4295 = vpow2.f32 %v2551_v17  ;;  %v2595_v32 = vmul.f32 1.442695, %v2504_v47 }
 0x33a   : > { %v5293_v33 = vpop.eup %4277  ;;  %4297 = vpow2.f32 %v2587_v23  ;;  %v2563_v0 = vmul.f32 1.442695, %v2488_v4 }
 0x33b   : > { %2717 = vadd.xlane.f32.xlu1 %v5268_v25  ;;  %v5295_v14 = vpop.eup %4279  ;;  %v2408_v2 = vpop.xlane.xlu0 %2407  ;;  %4299 = vpow2.f32 %v2555_v31 }
 0x33c   : > { %v5301_v62 = vpop.eup %4281  ;;  %4301 = vpow2.f32 %v2591_v34  ;;  %v2506_v46 = vsub.f32 %v5033_v54, %v2408_v2 }
 0x33d   : > { %v5303_v19 = vpop.eup %4283  ;;  %4303 = vpow2.f32 %v2559_v61 }
 0x33e   : > { %v5309_v52 = vpop.eup %4285  ;;  %4305 = vpow2.f32 %v2595_v32  ;;  %v2599_v31 = vmul.f32 1.442695, %v2506_v46 }
 0x33f   : > { %2685 = vadd.xlane.f32.xlu1 %v5274_v16  ;;  %v5311_v8 = vpop.eup %4287  ;;  %v2376_v60 = vpop.xlane.xlu0 %2375  ;;  %4307 = vpow2.f32 %v2563_v0 }
 0x340   : > { %v5317_v40 = vpop.eup %4289  ;;  %v2490_v42 = vsub.f32 %v5041_v57, %v2376_v60 }
 0x341   : > { %v5319_v55 = vpop.eup %4291 }
 0x342   : > { %v5325_v11 = vpop.eup %4293 }
 0x343   : > { %2721 = vadd.xlane.f32.xlu1 %v5282_v12  ;;  %v2412_v18 = vpop.xlane.xlu0 %2411  ;;  %v5330_v37 = vpop.eup %4295 }
 0x344   : > { %v5334_v3 = vpop.eup %4297  ;;  %v2508_v47 = vsub.f32 %v5049_v1, %v2412_v18 }
 0x345   : > { %v5338_v17 = vpop.eup %4299 }
 0x346   : > { %v5345_v38 = vpop.eup %4301 }
 0x347   : > { %2689 = vadd.xlane.f32.xlu1 %v5288_v9  ;;  %v2380_v39 = vpop.xlane.xlu0 %2379  ;;  %v5350_v54 = vpop.eup %4303 }
 0x348   : > { %v5355_v0 = vpop.eup %4305  ;;  %v2492_v46 = vsub.f32 %v5057_v5, %v2380_v39 }
 0x34b   : > { %2703 = vadd.xlane.f32.xlu0 %v5293_v33  ;;  %2725 = vadd.xlane.f32.xlu1 %v5295_v14 }
 0x34f   : > { %2671 = vadd.xlane.f32.xlu0 %v5301_v62  ;;  %2693 = vadd.xlane.f32.xlu1 %v5303_v19 }
 0x353   : > { %2707 = vadd.xlane.f32.xlu0 %v5309_v52  ;;  %2729 = vadd.xlane.f32.xlu1 %v5311_v8 }
 0x357   : > { %2675 = vadd.xlane.f32.xlu0 %v5317_v40  ;;  %2697 = vadd.xlane.f32.xlu1 %v5319_v55 }
 0x35b   : > { %2711 = vadd.xlane.f32.xlu0 %v5325_v11 }
 0x35f   : > { %2679 = vadd.xlane.f32.xlu0 %v5330_v37 }
 0x363   : > { %2715 = vadd.xlane.f32.xlu0 %v5334_v3 }
 0x367   : > { %v2448_v41 = vpop.xlane.xlu0 %2447  ;;  %2683 = vadd.xlane.f32.xlu0 %v5338_v17 }
 0x368   : > { %v2446_v44 = vpop.xlane.xlu1 %2445 }
 0x369   : > { %v2525_v23 = vsub.f32 %v5076_v48, %v2446_v44  ;;  %v2567_v48 = vmul.f32 1.442695, %v2490_v42  ;;  %v2526_v42 = vsub.f32 %v5073_v43, %v2448_v41 }
 0x36b   : > { %v2637_v49 = vmul.f32 1.442695, %v2525_v23  ;;  %v2416_v26 = vpop.xlane.xlu0 %2415  ;;  %2719 = vadd.xlane.f32.xlu0 %v5345_v38 }
 0x36c   : > { %v2414_v34 = vpop.xlane.xlu1 %2413 }
 0x36d   : > { %4309 = vpow2.f32 %v2637_v49  ;;  %v2509_v21 = vsub.f32 %v5084_v51, %v2414_v34  ;;  %v2603_v51 = vmul.f32 1.442695, %v2508_v47  ;;  %v5360_v49 = vpop.eup %4307  ;;  %v2510_v47 = vsub.f32 %v5081_v50, %v2416_v26 }
 0x36e   : > { %4311 = vpow2.f32 %v2599_v31  ;;  %v2571_v31 = vmul.f32 1.442695, %v2492_v46 }
 0x36f   : > { %v2605_v2 = vmul.f32 1.442695, %v2509_v21  ;;  %v2452_v61 = vpop.xlane.xlu0 %2451  ;;  %2687 = vadd.xlane.f32.xlu0 %v5350_v54 }
 0x370   : > { %v2450_v32 = vpop.xlane.xlu1 %2449  ;;  %v2528_v46 = vsub.f32 %v5089_v56, %v2452_v61  ;;  %v5772_v61 = vld [vmem:[#allocation14_spill] sm:$0xff] }
 0x371   : > { %4313 = vpow2.f32 %v2605_v2  ;;  %v2527_v4 = vsub.f32 %v5092_v59, %v2450_v32 }
 0x372   : > { %4315 = vpow2.f32 %v2567_v48  ;;  %v2639_v48 = vmul.f32 1.442695, %v2526_v42 }
 0x373   : > { %v2641_v57 = vmul.f32 1.442695, %v2527_v4  ;;  %v2420_v60 = vpop.xlane.xlu0 %2419  ;;  %2723 = vadd.xlane.f32.xlu0 %v5355_v0 }
 0x374   : > { %v2418_v44 = vpop.xlane.xlu1 %2417  ;;  %v2512_v42 = vsub.f32 %v5097_v63, %v2420_v60 }
 0x375   : > { %4317 = vpow2.f32 %v2641_v57  ;;  %v2511_v23 = vsub.f32 %v5100_v7, %v2418_v44 }
 0x376   : > { %4319 = vpow2.f32 %v2603_v51  ;;  %v2607_v51 = vmul.f32 1.442695, %v2510_v47  ;;  %v2611_v47 = vmul.f32 1.442695, %v2512_v42 }
 0x377   : > { %v5362_v1 = vpop.eup %4309  ;;  %v2609_v18 = vmul.f32 1.442695, %v2511_v23  ;;  %v5364_v59 = vpop.xlane.xlu0 %2455  ;;  %2691 = vadd.xlane.f32.xlu0 %v5360_v49 }
 0x378   : > { %v2454_v34 = vpop.xlane.xlu1 %2453  ;;  %2765 = vadd.xlane.f32.xlu1 %v5362_v1  ;;  %v5370_v7 = vpop.eup %4311 }
 0x379   : > { %4321 = vpow2.f32 %v2609_v18  ;;  %v2529_v5 = vsub.f32 %v5108_v53, %v2454_v34 }
 0x37a   : > { %4323 = vpow2.f32 %v2571_v31  ;;  %v2643_v31 = vmul.f32 1.442695, %v2528_v46 }
 0x37b   : > { %v5372_v39 = vpop.eup %4313  ;;  %v2645_v21 = vmul.f32 1.442695, %v2529_v5  ;;  %v5374_v2 = vpop.xlane.xlu0 %2423  ;;  %2727 = vadd.xlane.f32.xlu0 %v5370_v7 }
 0x37c   : > { %v2422_v43 = vpop.xlane.xlu1 %2421  ;;  %2733 = vadd.xlane.f32.xlu1 %v5372_v39  ;;  %v5380_v53 = vpop.eup %4315 }
 0x37d   : > { %4325 = vpow2.f32 %v2645_v21  ;;  %v2513_v41 = vsub.f32 %v5118_v13, %v2422_v43  ;;  %v5774_v43 = vld [vmem:[#allocation9_spill] sm:$0xff] }
 0x37e   : > { %4327 = vpow2.f32 %v2639_v48  ;;  %v2530_v63 = vsub.f32 %v5774_v43, %v5364_v59 }
 0x37f   : > { %v5382_v32 = vpop.eup %4317  ;;  %v2613_v4 = vmul.f32 1.442695, %v2513_v41  ;;  %v5384_v57 = vpop.xlane.xlu0 %2459  ;;  %2695 = vadd.xlane.f32.xlu0 %v5380_v53  ;;  %v5775_v41 = vld [vmem:[#allocation16_spill] sm:$0xff] }
 0x380   : > { %v2458_v50 = vpop.xlane.xlu1 %2457  ;;  %2769 = vadd.xlane.f32.xlu1 %v5382_v32  ;;  %v5390_v13 = vpop.eup %4319 }
 0x381   : > { %4329 = vpow2.f32 %v2613_v4  ;;  %v2531_v26 = vsub.f32 %v5128_v24, %v2458_v50 }
 0x382   : > { %4331 = vpow2.f32 %v2607_v51 }
 0x383   : > { %v5392_v44 = vpop.eup %4321  ;;  %v2649_v23 = vmul.f32 1.442695, %v2531_v26  ;;  %v5394_v18 = vpop.xlane.xlu0 %2427  ;;  %2731 = vadd.xlane.f32.xlu0 %v5390_v13 }
 0x384   : > { %v2426_v56 = vpop.xlane.xlu1 %2425  ;;  %2737 = vadd.xlane.f32.xlu1 %v5392_v44  ;;  %v5400_v24 = vpop.eup %4323 }
 0x385   : > { %4333 = vpow2.f32 %v2649_v23  ;;  %v2515_v34 = vsub.f32 %v5772_v61, %v2426_v56  ;;  %v2647_v23 = vmul.f32 1.442695, %v2530_v63  ;;  %v5778_v56 = vld [vmem:[#allocation18_spill] sm:$0xff]  ;;  %v5780_v63 = vld [vmem:[#allocation12_spill] sm:$0xff] }
 0x386   : > { %4335 = vpow2.f32 %v2643_v31  ;;  %v5777_v31 = vld [vmem:[#allocation11_spill] sm:$0xff] }
 0x387   : > { %v5402_v5 = vpop.eup %4325  ;;  %v2617_v21 = vmul.f32 1.442695, %v2515_v34  ;;  %v5404_v48 = vpop.xlane.xlu0 %2463  ;;  %2699 = vadd.xlane.f32.xlu0 %v5400_v24  ;;  %v2514_v42 = vsub.f32 %v5777_v31, %v5374_v2 }
 0x388   : > { %5773 = vst [vmem:[#allocation14_spill] sm:$0xff] %v5402_v5  ;;  %v2462_v60 = vpop.xlane.xlu1 %2461  ;;  %2773 = vadd.xlane.f32.xlu1 %v5402_v5  ;;  %v5411_v51 = vpop.eup %4327 }
 0x389   : > { %4337 = vpow2.f32 %v2617_v21  ;;  %v2533_v4 = vsub.f32 %v5775_v41, %v2462_v60  ;;  %v2532_v41 = vsub.f32 %v5780_v63, %v5384_v57 }
 0x38a   : > { %4339 = vpow2.f32 %v2611_v47  ;;  %v2615_v47 = vmul.f32 1.442695, %v2514_v42  ;;  %v5783_v42 = vld [vmem:[#allocation13_spill] sm:$0xff] }
 0x38b   : > { %v5413_v46 = vpop.eup %4329  ;;  %v2653_v50 = vmul.f32 1.442695, %v2533_v4  ;;  %v2432_v26 = vpop.xlane.xlu0 %2431  ;;  %2767 = vadd.xlane.f32.xlu0 %v5411_v51  ;;  %v5781_v4 = vld [vmem:[#allocation20_spill] sm:$0xff]  ;;  %v2516_v57 = vsub.f32 %v5783_v42, %v5394_v18 }
 0x38c   : > { %5776 = vst [vmem:[#allocation9_spill] sm:$0xff] %v5413_v46  ;;  %v2430_v59 = vpop.xlane.xlu1 %2429  ;;  %2741 = vadd.xlane.f32.xlu1 %v5413_v46  ;;  %v5420_v34 = vpop.eup %4331 }
 0x38d   : > { %4341 = vpow2.f32 %v2653_v50  ;;  %v2517_v61 = vsub.f32 %v5778_v56, %v2430_v59 }
 0x38e   : > { %4343 = vpow2.f32 %v2647_v23  ;;  %v2651_v23 = vmul.f32 1.442695, %v2532_v41  ;;  %v5786_v41 = vld [vmem:[#allocation15_spill] sm:$0xff] }
 0x38f   : > { %v5422_v21 = vpop.eup %4333  ;;  %v2621_v43 = vmul.f32 1.442695, %v2517_v61  ;;  %v2468_v60 = vpop.xlane.xlu0 %2467  ;;  %2735 = vadd.xlane.f32.xlu0 %v5420_v34  ;;  %v2534_v18 = vsub.f32 %v5786_v41, %v5404_v48 }
 0x390   : > { %5779 = vst [vmem:[#allocation16_spill] sm:$0xff] %v5422_v21  ;;  %v2466_v2 = vpop.xlane.xlu1 %2465  ;;  %2777 = vadd.xlane.f32.xlu1 %v5422_v21  ;;  %v5429_v31 = vpop.eup %4335 }
 0x391   : > { %4345 = vpow2.f32 %v2621_v43  ;;  %v2535_v50 = vsub.f32 %v5781_v4, %v2466_v2  ;;  %v5784_v43 = vld [vmem:[#allocation22_spill] sm:$0xff] }
 0x392   : > { %4347 = vpow2.f32 %v2615_v47  ;;  %v2619_v47 = vmul.f32 1.442695, %v2516_v57  ;;  %v5789_v57 = vld [vmem:[#allocation17_spill] sm:$0xff] }
 0x393   : > { %v5431_v59 = vpop.eup %4337  ;;  %v2657_v56 = vmul.f32 1.442695, %v2535_v50  ;;  %v5433_v61 = vpop.xlane.xlu0 %2435  ;;  %2771 = vadd.xlane.f32.xlu0 %v5429_v31  ;;  %v2518_v5 = vsub.f32 %v5789_v57, %v2432_v26 }
 0x394   : > { %5782 = vst [vmem:[#allocation11_spill] sm:$0xff] %v5431_v59  ;;  %v2434_v63 = vpop.xlane.xlu1 %2433  ;;  %2745 = vadd.xlane.f32.xlu1 %v5431_v59  ;;  %v5440_v4 = vpop.eup %4339 }
 0x395   : > { %4349 = vpow2.f32 %v2657_v56  ;;  %v2519_v2 = vsub.f32 %v5784_v43, %v2434_v63  ;;  %5785 = vst [vmem:[#allocation18_spill] sm:$0xff] %v5440_v4  ;;  %v5787_v56 = vld [vmem:[#allocation24_spill] sm:$0xff] }
 0x396   : > { %4351 = vpow2.f32 %v2651_v23  ;;  %v2655_v23 = vmul.f32 1.442695, %v2534_v18 }
 0x397   : > { %v5442_v45 = vpop.eup %4341  ;;  %v2625_v50 = vmul.f32 1.442695, %v2519_v2  ;;  %v5444_v21 = vpop.xlane.xlu0 %2471  ;;  %2739 = vadd.xlane.f32.xlu0 %v5440_v4 }
 0x398   : > { %v2470_v42 = vpop.xlane.xlu1 %2469  ;;  %2781 = vadd.xlane.f32.xlu1 %v5442_v45  ;;  %v5451_v43 = vpop.eup %4343 }
 0x399   : > { %4353 = vpow2.f32 %v2625_v50  ;;  %v2537_v63 = vsub.f32 %v5787_v56, %v2470_v42  ;;  %v2623_v56 = vmul.f32 1.442695, %v2518_v5  ;;  %v5793_v5 = vld [vmem:[#allocation21_spill] sm:$0xff] }
 0x39a   : > { %4355 = vpow2.f32 %v2619_v47 }
 0x39b   : > { %v5453_v59 = vpop.eup %4345  ;;  %v2661_v2 = vmul.f32 1.442695, %v2537_v63  ;;  %v2440_v46 = vpop.xlane.xlu0 %2439  ;;  %2775 = vadd.xlane.f32.xlu0 %v5451_v43  ;;  %v5791_v63 = vld [vmem:[#allocation19_spill] sm:$0xff] }
 0x39c   : > { %5788 = vst [vmem:[#allocation12_spill] sm:$0xff] %v5453_v59  ;;  %v2438_v4 = vpop.xlane.xlu1 %2437  ;;  %2749 = vadd.xlane.f32.xlu1 %v5453_v59  ;;  %v5459_v50 = vpop.eup %4347  ;;  %v2536_v47 = vsub.f32 %v5791_v63, %v2468_v60 }
 0x39d   : > { %4357 = vpow2.f32 %v2661_v2  ;;  %v2521_v48 = vsub.f32 %v5192_v27, %v2438_v4 }
 0x39e   : > { %4359 = vpow2.f32 %v2655_v23  ;;  %v2520_v23 = vsub.f32 %v5793_v5, %v5433_v61 }
 0x39f   : > { %v5461_v41 = vpop.eup %4349  ;;  %v2629_v42 = vmul.f32 1.442695, %v2521_v48  ;;  %2743 = vadd.xlane.f32.xlu0 %v5459_v50  ;;  %v2476_v26 = vpop.xlane.xlu0 %2475  ;;  %v2659_v48 = vmul.f32 1.442695, %v2536_v47  ;;  %v5795_v47 = vld [vmem:[#allocation23_spill] sm:$0xff] }
 0x3a0   : > { %5790 = vst [vmem:[#allocation20_spill] sm:$0xff] %v5461_v41  ;;  %v2474_v18 = vpop.xlane.xlu1 %2473  ;;  %2785 = vadd.xlane.f32.xlu1 %v5461_v41  ;;  %v5467_v57 = vpop.eup %4351  ;;  %v2627_v61 = vmul.f32 1.442695, %v2520_v23  ;;  %v2522_v23 = vsub.f32 %v5187_v28, %v2440_v46 }
 0x3a1   : > { %4361 = vpow2.f32 %v2629_v42  ;;  %v2539_v2 = vsub.f32 %v5201_v6, %v2474_v18 }
 0x3a2   : > { %4363 = vpow2.f32 %v2623_v56  ;;  %v5733_v56 = vmov 0.0  }
 0x3a3   : > { %v5469_v27 = vpop.eup %4353  ;;  %v2665_v4 = vmul.f32 1.442695, %v2539_v2  ;;  %2779 = vadd.xlane.f32.xlu0 %v5467_v57  ;;  %v2444_v18 = vpop.xlane.xlu0 %2443  ;;  %3961 = vmatprep.mubr.msk.f32.mxu0 %vm4575_vm2, %v5733_v56  ;;  %v2538_v2 = vsub.f32 %v5795_v47, %v5444_v21 }
 0x3a4   : > { %5792 = vst [vmem:[#allocation13_spill] sm:$0xff] %v5469_v27  ;;  %2753 = vadd.xlane.f32.xlu1 %v5469_v27  ;;  %v2442_v60 = vpop.xlane.xlu1 %2441  ;;  %v5476_v63 = vpop.eup %4355  ;;  %3926 = vmatprep.mubr.msk.f32.mxu1 %vm4575_vm2, %v5733_v56  ;;  %v2631_v56 = vmul.f32 1.442695, %v2522_v23  ;;  %v2524_v27 = vsub.f32 %v5207_v36, %v2444_v18 }
 0x3a5   : > { %4365 = vpow2.f32 %v2665_v4  ;;  %v2523_v42 = vsub.f32 %v5212_v15, %v2442_v60 }
 0x3a6   : > { %4367 = vpow2.f32 %v2659_v48  ;;  %v2663_v48 = vmul.f32 1.442695, %v2538_v2  ;;  %v2540_v2 = vsub.f32 %v5198_v30, %v2476_v26  ;;  %v249_v26 = vld [vmem:[%s5703_s2 + $0x50] sm:$0xff] }
 0x3a7   : > { %v5478_v6 = vpop.eup %4357  ;;  %v2633_v41 = vmul.f32 1.442695, %v2523_v42  ;;  %2747 = vadd.xlane.f32.xlu0 %v5476_v63  ;;  %v5798_v42 = vld [vmem:[#allocation5_spill] sm:$0xff] }
 0x3a8   : > { %5794 = vst [vmem:[#allocation22_spill] sm:$0xff] %v5478_v6  ;;  %2789 = vadd.xlane.f32.xlu1 %v5478_v6  ;;  %v2702_v15 = vpop.xlane.xlu1 %2701  ;;  %v5488_v4 = vpop.eup %4359  ;;  %v2667_v36 = vmul.f32 1.442695, %v2540_v2 }
 0x3a9   : > { %4369 = vpow2.f32 %v2633_v41  ;;  %5796 = vst [vmem:[#allocation15_spill] sm:$0xff] %v5488_v4 }
 0x3aa   : > { %4371 = vpow2.f32 %v2627_v61 }
 0x3ab   : > { %v5490_v5 = vpop.eup %4361  ;;  %2783 = vadd.xlane.f32.xlu0 %v5488_v4  ;;  %v299_v60 = vpop.permute.xlu0 %298  ;;  %4373 = vpow2.f32 %v2663_v48  ;;  %v5808_v4 = vmov 0.0|0.0  }
 0x3ac   : > { %5797 = vst [vmem:[#allocation24_spill] sm:$0xff] %v5490_v5  ;;  %v5495_v21 = vadd.f32 %v5798_v42, %v299_v60  ;;  %2757 = vadd.xlane.f32.xlu1 %v5490_v5  ;;  %v2670_v47 = vpop.xlane.xlu1 %2669  ;;  %v5498_v6 = vpop.eup %4363  ;;  %4375 = vpow2.f32 %v2631_v56  ;;  %v2635_v60 = vmul.f32 1.442695, %v2524_v27 }
 0x3ad   : > { %5799 = vst [vmem:[#allocation17_spill] sm:$0xff] %v5498_v6 }
 0x3ae   : > { %4377 = vpow2.f32 %v2635_v60 }
 0x3af   : > { %v5500_v41 = vpop.eup %4365  ;;  %2751 = vadd.xlane.f32.xlu0 %v5498_v6  ;;  %4379 = vpow2.f32 %v2667_v36 }
 0x3b0   : > { %5800 = vst [vmem:[#allocation19_spill] sm:$0xff] %v5500_v41  ;;  %2793 = vadd.xlane.f32.xlu1 %v5500_v41  ;;  %v5505_v61 = vpop.eup %4367  ;;  %v2706_v46 = vpop.xlane.xlu1 %2705  ;;  %4381 = vrcp.f32 %v2702_v15 }
 0x3b1   : > { %5801 = vst [vmem:[#allocation21_spill] sm:$0xff] %v5505_v61 }
 0x3b3   : > { %v5507_v28 = vpop.eup %4369  ;;  %2787 = vadd.xlane.f32.xlu0 %v5505_v61 }
 0x3b4   : > { %5802 = vst [vmem:[#allocation23_spill] sm:$0xff] %v5507_v28  ;;  %2761 = vadd.xlane.f32.xlu1 %v5507_v28  ;;  %v5512_v42 = vpop.eup %4371  ;;  %v2674_v18 = vpop.xlane.xlu1 %2673 }
 0x3b5   : > { %5803 = vst [vmem:[#allocation5_spill] sm:$0xff] %v5512_v42  ;;  %v5515_v48 = vpop.eup %4373 }
 0x3b6   : > { %5804 = vst [vmem:[#allocation27_spill] sm:$0xff] %v5515_v48  ;;  %v5518_v23 = vpop.eup %4375 }
 0x3b7   : > { %2755 = vadd.xlane.f32.xlu0 %v5512_v42  ;;  %5805 = vst [vmem:[#allocation28_spill] sm:$0xff] %v5518_v23 }
 0x3b8   : > { %v2710_v56 = vpop.xlane.xlu1 %2709  ;;  %v5521_v30 = vpop.eup %4377 }
 0x3b9   : > { %5806 = vst [vmem:[#allocation29_spill] sm:$0xff] %v5521_v30  ;;  %v5527_v2 = vpop.eup %4379 }
 0x3ba   : > { %5807 = vst [vmem:[#allocation30_spill] sm:$0xff] %v5527_v2 }
 0x3bb   : > { %2791 = vadd.xlane.f32.xlu0 %v5515_v48 }
 0x3bc   : > { %v2678_v27 = vpop.xlane.xlu1 %2677 }
 0x3bf   : > { %2759 = vadd.xlane.f32.xlu0 %v5518_v23  ;;  %v250_v23 = vld [vmem:[%s5703_s2 + $0x58] sm:$0xff] }
 0x3c0   : > { %v2714_v60 = vpop.xlane.xlu1 %2713 }
 0x3c3   : > { %2763 = vadd.xlane.f32.xlu0 %v5521_v30 }
 0x3c4   : > { %v2682_v36 = vpop.xlane.xlu1 %2681 }
 0x3c5   : > { %303 = vperm.xlu1 %4252, %v249_v26  }
 0x3c7   : > { %2795 = vadd.xlane.f32.xlu0 %v5527_v2  ;;  %v4382_v2 = vpop.eup %4381 }
 0x3c8   : > { %v5530_v41 = vpop.xlane.xlu1 %2717 }
 0x3cc   : > { %v5535_v30 = vpop.xlane.xlu1 %2685 }
 0x3d0   : > { %v5537_v15 = vpop.xlane.xlu1 %2721 }
 0x3d8   : > { %v2704_v28 = vpop.xlane.xlu0 %2703 }
 0x3d9   : > { %4383 = vrcp.f32 %v2704_v28  ;;  %v2830_v28 = vmul.f32 %v4382_v2, %v5219_v35 }
 0x3da   : > { %4385 = vrcp.f32 %v2670_v47 }
 0x3dc   : > { %v2672_v5 = vpop.xlane.xlu0 %2671 }
 0x3dd   : > { %4387 = vrcp.f32 %v2672_v5  ;;  %308 = vperm.xlu0 %4251, %v250_v23  }
 0x3de   : > { %4389 = vrcp.f32 %v2706_v46 }
 0x3e0   : > { %v2708_v26 = vpop.xlane.xlu0 %2707 }
 0x3e1   : > { %4391 = vrcp.f32 %v2708_v26 }
 0x3e2   : > { %4393 = vrcp.f32 %v2674_v18  ;;  %v5543_v18 = vpop.xlane.xlu1 %2689 }
 0x3e3   : > { %v4384_v48 = vpop.eup %4383 }
 0x3e4   : > { %v2676_v42 = vpop.xlane.xlu0 %2675  ;;  %v2832_v61 = vmul.f32 %v4384_v48, %v5293_v33  ;;  %v4386_v6 = vpop.eup %4385 }
 0x3e5   : > { %4395 = vrcp.f32 %v2676_v42  ;;  %v2798_v46 = vmul.f32 %v4386_v6, %v5225_v10 }
 0x3e6   : > { %v4067_v47 = vpack.c.bf16 %v2832_v61, %v2830_v28  ;;  %4397 = vrcp.f32 %v2710_v56  ;;  %v5809_v61 = vld [vmem:[#allocation25_spill] sm:$0xff]  ;;  %v5810_v28 = vld [vmem:[#allocation26_spill] sm:$0xff] }
 0x3e7   : > { %v4388_v59 = vpop.eup %4387 }
 0x3e8   : > { %v2712_v5 = vpop.xlane.xlu0 %2711  ;;  %4068 = vmatpush3.bf16.xpose.msra.mxu0 %v4067_v47  ;;  %v2800_v23 = vmul.f32 %v4388_v59, %v5301_v62  ;;  %v4390_v26 = vpop.eup %4389 }
 0x3e9   : > { %4399 = vrcp.f32 %v2712_v5  ;;  %4069 = vmatprep.subr.bf16.mxu0 %v5808_v4  ;;  %v2834_v42 = vmul.f32 %v4390_v26, %v5809_v61  ;;  %v5549_v59 = vpop.xlane.xlu1 %2725 }
 0x3ea   : > { %v4043_v35 = vpack.c.bf16 %v2800_v23, %v2798_v46  ;;  %4401 = vrcp.f32 %v2678_v27 }
 0x3eb   : > { %v4392_v2 = vpop.eup %4391 }
 0x3ec   : > { %v2680_v33 = vpop.xlane.xlu0 %2679  ;;  %4044 = vmatpush3.bf16.xpose.msra.mxu1 %v4043_v35  ;;  %v2836_v48 = vmul.f32 %v4392_v2, %v5309_v52  ;;  %v4394_v56 = vpop.eup %4393 }
 0x3ed   : > { %4403 = vrcp.f32 %v2680_v33  ;;  %4045 = vmatprep.subr.bf16.mxu1 %v5808_v4  ;;  %v2802_v47 = vmul.f32 %v4394_v56, %v5810_v28  ;;  %v2694_v2 = vpop.xlane.xlu1 %2693 }
 0x3ee   : > { %v4070_v10 = vpack.c.bf16 %v2836_v48, %v2834_v42  ;;  %4405 = vrcp.f32 %v2714_v60 }
 0x3ef   : > { %v4396_v62 = vpop.eup %4395 }
 0x3f0   : > { %v2716_v6 = vpop.xlane.xlu0 %2715  ;;  %4071 = vmatpush3.bf16.xpose.msra.mxu0 %v4070_v10  ;;  %v2804_v27 = vmul.f32 %v4396_v62, %v5317_v40  ;;  %v4398_v5 = vpop.eup %4397 }
 0x3f1   : > { %4407 = vrcp.f32 %v2716_v6  ;;  %4072 = vmatprep.subr.bf16.mxu0 %v5808_v4  ;;  %v2838_v26 = vmul.f32 %v4398_v5, %v5244_v22  ;;  %v2730_v56 = vpop.xlane.xlu1 %2729 }
 0x3f2   : > { %v4046_v52 = vpack.c.bf16 %v2804_v27, %v2802_v47  ;;  %4409 = vrcp.f32 %v2682_v36 }
 0x3f3   : > { %v4400_v46 = vpop.eup %4399 }
 0x3f4   : > { %v2684_v23 = vpop.xlane.xlu0 %2683  ;;  %4047 = vmatpush3.bf16.xpose.msra.mxu1 %v4046_v52  ;;  %v2840_v60 = vmul.f32 %v4400_v46, %v5325_v11  ;;  %v4402_v35 = vpop.eup %4401 }
 0x3f5   : > { %4411 = vrcp.f32 %v2684_v23  ;;  %4048 = vmatprep.subr.bf16.mxu1 %v5808_v4  ;;  %v2806_v42 = vmul.f32 %v4402_v35, %v5250_v58  ;;  %v2698_v5 = vpop.xlane.xlu1 %2697 }
 0x3f6   : > { %v4073_v33 = vpack.c.bf16 %v2840_v60, %v2838_v26  ;;  %4413 = vrcp.f32 %v5530_v41 }
 0x3f7   : > { %v4404_v40 = vpop.eup %4403 }
 0x3f8   : > { %v2720_v61 = vpop.xlane.xlu0 %2719  ;;  %4074 = vmatpush3.bf16.xpose.msra.mxu0 %v4073_v33  ;;  %v2808_v36 = vmul.f32 %v4404_v40, %v5330_v37  ;;  %v4406_v48 = vpop.eup %4405 }
 0x3f9   : > { %4415 = vrcp.f32 %v2720_v61  ;;  %4075 = vmatprep.subr.bf16.mxu0 %v5808_v4  ;;  %v2842_v62 = vmul.f32 %v4406_v48, %v5254_v20 }
 0x3fa   : > { %v4049_v22 = vpack.c.bf16 %v2808_v36, %v2806_v42  ;;  %4417 = vrcp.f32 %v5535_v30 }
 0x3fb   : > { %v4408_v11 = vpop.eup %4407 }
 0x3fc   : > { %v2688_v10 = vpop.xlane.xlu0 %2687  ;;  %4050 = vmatpush3.bf16.xpose.msra.mxu1 %v4049_v22  ;;  %v2844_v41 = vmul.f32 %v4408_v11, %v5334_v3  ;;  %v4410_v6 = vpop.eup %4409 }
 0x3fd   : > { %4419 = vrcp.f32 %v2688_v10  ;;  %4051 = vmatprep.subr.bf16.mxu1 %v5808_v4  ;;  %v2810_v47 = vmul.f32 %v4410_v6, %v5260_v29 }
 0x3fe   : > { %v4076_v58 = vpack.c.bf16 %v2844_v41, %v2842_v62  ;;  %4421 = vrcp.f32 %v5537_v15 }
 0x3ff   : > { %v4412_v37 = vpop.eup %4411 }
 0x400   : > { %v2724_v28 = vpop.xlane.xlu0 %2723  ;;  %4077 = vmatpush3.bf16.xpose.msra.mxu0 %v4076_v58  ;;  %v2812_v30 = vmul.f32 %v4412_v37, %v5338_v17  ;;  %v4414_v27 = vpop.eup %4413 }
 0x401   : > { %4423 = vrcp.f32 %v2724_v28  ;;  %4078 = vmatprep.subr.bf16.mxu0 %v5808_v4  ;;  %v2846_v46 = vmul.f32 %v4414_v27, %v5268_v25 }
 0x402   : > { %v4052_v20 = vpack.c.bf16 %v2812_v30, %v2810_v47  ;;  %4425 = vrcp.f32 %v5543_v18 }
 0x403   : > { %v4416_v3 = vpop.eup %4415 }
 0x404   : > { %v2692_v52 = vpop.xlane.xlu0 %2691  ;;  %4053 = vmatpush3.bf16.xpose.msra.mxu1 %v4052_v20  ;;  %v2848_v15 = vmul.f32 %v4416_v3, %v5345_v38  ;;  %v4418_v23 = vpop.eup %4417 }
 0x405   : > { %4427 = vrcp.f32 %v2692_v52  ;;  %v2766_v29 = vpop.xlane.xlu1 %2765  ;;  %4054 = vmatprep.subr.bf16.mxu1 %v5808_v4  ;;  %v2814_v35 = vmul.f32 %v4418_v23, %v5274_v16 }
 0x406   : > { %v4079_v17 = vpack.c.bf16 %v2848_v15, %v2846_v46  ;;  %4429 = vrcp.f32 %v5549_v59 }
 0x407   : > { %v4420_v26 = vpop.eup %4419 }
 0x408   : > { %v2728_v60 = vpop.xlane.xlu0 %2727  ;;  %4080 = vmatpush3.bf16.xpose.msra.mxu0 %v4079_v17  ;;  %v2816_v18 = vmul.f32 %v4420_v26, %v5350_v54  ;;  %v4422_v33 = vpop.eup %4421 }
 0x409   : > { %4431 = vrcp.f32 %v2728_v60  ;;  %v2734_v25 = vpop.xlane.xlu1 %2733  ;;  %4081 = vmatprep.subr.bf16.mxu0 %v5808_v4  ;;  %v2850_v42 = vmul.f32 %v4422_v33, %v5282_v12 }
 0x40a   : > { %v4055_v38 = vpack.c.bf16 %v2816_v18, %v2814_v35  ;;  %4433 = vrcp.f32 %v2694_v2 }
 0x40b   : > { %v4424_v40 = vpop.eup %4423 }
 0x40c   : > { %v2696_v61 = vpop.xlane.xlu0 %2695  ;;  %4056 = vmatpush3.bf16.xpose.msra.mxu1 %v4055_v38  ;;  %v2852_v59 = vmul.f32 %v4424_v40, %v5355_v0  ;;  %v4426_v36 = vpop.eup %4425 }
 0x40d   : > { %4435 = vrcp.f32 %v2696_v61  ;;  %v2770_v48 = vpop.xlane.xlu1 %2769  ;;  %4057 = vmatprep.subr.bf16.mxu1 %v5808_v4  ;;  %v2818_v11 = vmul.f32 %v4426_v36, %v5288_v9  ;;  %v5813_v36 = vld [vmem:[#allocation6_spill] sm:$0xff] }
 0x40e   : > { %v4082_v16 = vpack.c.bf16 %v2852_v59, %v2850_v42  ;;  %4437 = vrcp.f32 %v2730_v56  ;;  %v5811_v59 = vmov 0.0  }
 0x40f   : > { %v4428_v54 = vpop.eup %4427 }
 0x410   : > { %v2732_v22 = vpop.xlane.xlu0 %2731  ;;  %4083 = vmatpush3.bf16.xpose.msra.mxu0 %v4082_v16  ;;  %v2820_v2 = vmul.f32 %v4428_v54, %v5360_v49  ;;  %v4430_v10 = vpop.eup %4429 }
 0x411   : > { %4439 = vrcp.f32 %v2732_v22  ;;  %v2738_v62 = vpop.xlane.xlu1 %2737  ;;  %4084 = vmatprep.subr.bf16.mxu0 %v5808_v4  ;;  %v2854_v6 = vmul.f32 %v4430_v10, %v5295_v14 }
 0x412   : > { %v4058_v12 = vpack.c.bf16 %v2820_v2, %v2818_v11  ;;  %4441 = vrcp.f32 %v2698_v5 }
 0x413   : > { %v4432_v0 = vpop.eup %4431 }
 0x414   : > { %v2700_v41 = vpop.xlane.xlu0 %2699  ;;  %4059 = vmatpush3.bf16.xpose.msra.mxu1 %v4058_v12  ;;  %v2856_v56 = vmul.f32 %v4432_v0, %v5370_v7  ;;  %v4434_v58 = vpop.eup %4433  ;;  %v5814_v0 = vld [vmem:[#allocation18_spill] sm:$0xff] }
 0x415   : > { %4443 = vrcp.f32 %v2700_v41  ;;  %v2774_v37 = vpop.xlane.xlu1 %2773  ;;  %4060 = vmatprep.subr.bf16.mxu1 %v5808_v4  ;;  %v2822_v47 = vmul.f32 %v4434_v58, %v5303_v19 }
 0x416   : > { %v4085_v9 = vpack.c.bf16 %v2856_v56, %v2854_v6  ;;  %4445 = vrcp.f32 %v2766_v29 }
 0x417   : > { %v4436_v49 = vpop.eup %4435 }
 0x418   : > { %v2768_v28 = vpop.xlane.xlu0 %2767  ;;  %4086 = vmatpush3.bf16.xpose.msra.mxu0 %v4085_v9  ;;  %v2824_v30 = vmul.f32 %v4436_v49, %v5380_v53  ;;  %v4438_v27 = vpop.eup %4437 }
 0x419   : > { %4447 = vrcp.f32 %v2768_v28  ;;  %v2742_v5 = vpop.xlane.xlu1 %2741  ;;  %4087 = vmatprep.subr.bf16.mxu0 %v5808_v4  ;;  %v2858_v3 = vmul.f32 %v4438_v27, %v5311_v8 }
 0x41a   : > { %v4061_v14 = vpack.c.bf16 %v2824_v30, %v2822_v47  ;;  %4449 = vrcp.f32 %v2734_v25 }
 0x41b   : > { %v4440_v7 = vpop.eup %4439 }
 0x41c   : > { %v2736_v20 = vpop.xlane.xlu0 %2735  ;;  %4062 = vmatpush3.bf16.xpose.msra.mxu1 %v4061_v14  ;;  %v2860_v52 = vmul.f32 %v4440_v7, %v5390_v13  ;;  %v4442_v46 = vpop.eup %4441 }
 0x41d   : > { %4451 = vrcp.f32 %v2736_v20  ;;  %v2778_v15 = vpop.xlane.xlu1 %2777  ;;  %4063 = vmatprep.subr.bf16.mxu1 %v5808_v4  ;;  %v2826_v29 = vmul.f32 %v4442_v46, %v5319_v55  ;;  %v5817_v46 = vld [vmem:[#allocation16_spill] sm:$0xff] }
 0x41e   : > { %v4088_v19 = vpack.c.bf16 %v2860_v52, %v2858_v3  ;;  %4453 = vrcp.f32 %v2770_v48 }
 0x41f   : > { %v4444_v53 = vpop.eup %4443 }
 0x420   : > { %v2772_v23 = vpop.xlane.xlu0 %2771  ;;  %4089 = vmatpush3.bf16.xpose.msra.mxu0 %v4088_v19  ;;  %v2828_v17 = vmul.f32 %v4444_v53, %v5400_v24  ;;  %v4446_v26 = vpop.eup %4445 }
 0x421   : > { %4455 = vrcp.f32 %v2772_v23  ;;  %v2746_v60 = vpop.xlane.xlu1 %2745  ;;  %4114 = vmatprep.subr.bf16.mxu0 %v5808_v4  ;;  %v2894_v18 = vmul.f32 %v4446_v26, %v5362_v1  ;;  %v5818_v26 = vld [vmem:[#allocation11_spill] sm:$0xff] }
 0x422   : > { %v4064_v8 = vpack.c.bf16 %v2828_v17, %v2826_v29  ;;  %4457 = vrcp.f32 %v2738_v62 }
 0x423   : > { %v4448_v13 = vpop.eup %4447 }
 0x424   : > { %v2740_v35 = vpop.xlane.xlu0 %2739  ;;  %4065 = vmatpush3.bf16.xpose.msra.mxu1 %v4064_v8  ;;  %v2896_v33 = vmul.f32 %v4448_v13, %v5411_v51  ;;  %v4450_v25 = vpop.eup %4449  ;;  %v5812_v51 = vld [vmem:[#allocation10_spill] sm:$0xff] }
 0x425   : > { %4459 = vrcp.f32 %v2740_v35  ;;  %4090 = vmatprep.subr.bf16.mxu1 %v5808_v4  ;;  %v2782_v55 = vpop.xlane.xlu1 %2781  ;;  %v2862_v61 = vmul.f32 %v4450_v25, %v5372_v39  ;;  %v455_v48 = vadd.f32 %v5813_v36, %v5812_v51 }
 0x426   : > { %v4115_v24 = vpack.c.bf16 %v2896_v33, %v2894_v18  ;;  %4461 = vrcp.f32 %v2774_v37  ;;  %v5815_v37 = vld [vmem:[#allocation14_spill] sm:$0xff] }
 0x427   : > { %v4452_v38 = vpop.eup %4451  ;;  %3962 = vmatmul.mubr.f32.vlgmr.msra.gmra.mrb[38].mxu0 %v5495_v21 }
 0x428   : > { %v2776_v40 = vpop.xlane.xlu0 %2775  ;;  %4116 = vmatpush3.bf16.xpose.msra.mxu0 %v4115_v24  ;;  %v2864_v42 = vmul.f32 %v4452_v38, %v5420_v34  ;;  %4031 = vmatprep.mubr.msk.f32.mxu0 %vm4575_vm2, %v5811_v59  ;;  %v4454_v1 = vpop.eup %4453 }
 0x429   : > { %4463 = vrcp.f32 %v2776_v40  ;;  %4117 = vmatprep.subr.bf16.mxu0 %v5808_v4  ;;  %v2750_v21 = vpop.xlane.xlu1 %2749  ;;  %v2898_v39 = vmul.f32 %v4454_v1, %v5382_v32  ;;  %v5821_v1 = vld [vmem:[#allocation17_spill] sm:$0xff] }
 0x42a   : > { %v4091_v16 = vpack.c.bf16 %v2864_v42, %v2862_v61  ;;  %4465 = vrcp.f32 %v2742_v5  ;;  %v5816_v5 = vld [vmem:[#allocation9_spill] sm:$0xff]  ;;  %v5820_v42 = vld [vmem:[#allocation12_spill] sm:$0xff] }
 0x42b   : > { %v4456_v54 = vpop.eup %4455  ;;  %3927 = vmatmul.mubr.f32.vlgmr.msra.gmra.mrb[38].mxu1 %v455_v48 }
 0x42c   : > { %v2744_v22 = vpop.xlane.xlu0 %2743  ;;  %4092 = vmatpush3.bf16.xpose.msra.mxu1 %v4091_v16  ;;  %v2900_v34 = vmul.f32 %v4456_v54, %v5429_v31  ;;  %3996 = vmatprep.mubr.msk.f32.mxu1 %vm4575_vm2, %v5811_v59  ;;  %v4458_v11 = vpop.eup %4457 }
 0x42d   : > { %4467 = vrcp.f32 %v2744_v22  ;;  %4093 = vmatprep.subr.bf16.mxu1 %v5808_v4  ;;  %v2866_v12 = vmul.f32 %v4458_v11, %v5392_v44  ;;  %v2786_v32 = vpop.xlane.xlu1 %2785 }
 0x42e   : > { %v4118_v2 = vpack.c.bf16 %v2900_v34, %v2898_v39  ;;  %4469 = vrcp.f32 %v2778_v15  ;;  %v5823_v39 = vld [vmem:[#allocation21_spill] sm:$0xff] }
 0x42f   : > { %v4460_v10 = vpop.eup %4459 }
 0x430   : > { %v2780_v62 = vpop.xlane.xlu0 %2779  ;;  %4119 = vmatpush3.bf16.xpose.msra.mxu0 %v4118_v2  ;;  %v2868_v41 = vmul.f32 %v4460_v10, %v5814_v0  ;;  %v4462_v6 = vpop.eup %4461  ;;  %v5824_v0 = vld [vmem:[#allocation13_spill] sm:$0xff] }
 0x431   : > { %4471 = vrcp.f32 %v2780_v62  ;;  %4120 = vmatprep.subr.bf16.mxu0 %v5808_v4  ;;  %v2902_v9 = vmul.f32 %v4462_v6, %v5815_v37  ;;  %v2754_v30 = vpop.xlane.xlu1 %2753  ;;  %v5825_v6 = vld [vmem:[#allocation5_spill] sm:$0xff] }
 0x432   : > { %v4094_v31 = vpack.c.bf16 %v2868_v41, %v2866_v12  ;;  %4473 = vrcp.f32 %v2746_v60 }
 0x433   : > { %v4464_v56 = vpop.eup %4463 }
 0x434   : > { %v2748_v58 = vpop.xlane.xlu0 %2747  ;;  %4095 = vmatpush3.bf16.xpose.msra.mxu1 %v4094_v31  ;;  %v2904_v49 = vmul.f32 %v4464_v56, %v5451_v43  ;;  %v4466_v28 = vpop.eup %4465 }
 0x435   : > { %4475 = vrcp.f32 %v2748_v58  ;;  %4096 = vmatprep.subr.bf16.mxu1 %v5808_v4  ;;  %v2870_v14 = vmul.f32 %v4466_v28, %v5816_v5  ;;  %v2790_v23 = vpop.xlane.xlu1 %2789  ;;  %v5827_v28 = vld [vmem:[#allocation27_spill] sm:$0xff]  ;;  %v5828_v5 = vld [vmem:[#allocation24_spill] sm:$0xff] }
 0x436   : > { %v4121_v44 = vpack.c.bf16 %v2904_v49, %v2902_v9  ;;  %4477 = vrcp.f32 %v2782_v55  ;;  %v5819_v55 = vld [vmem:[#allocation15_spill] sm:$0xff]  ;;  %v5826_v9 = vld [vmem:[#allocation22_spill] sm:$0xff] }
 0x437   : > { %v4468_v47 = vpop.eup %4467 }
 0x438   : > { %v2784_v27 = vpop.xlane.xlu0 %2783  ;;  %4122 = vmatpush3.bf16.xpose.msra.mxu0 %v4121_v44  ;;  %v2872_v7 = vmul.f32 %v4468_v47, %v5459_v50  ;;  %v4470_v20 = vpop.eup %4469 }
 0x439   : > { %4479 = vrcp.f32 %v2784_v27  ;;  %4123 = vmatprep.subr.bf16.mxu0 %v5808_v4  ;;  %v2906_v15 = vmul.f32 %v4470_v20, %v5817_v46  ;;  %v2758_v18 = vpop.xlane.xlu1 %2757 }
 0x43a   : > { %v4097_v3 = vpack.c.bf16 %v2872_v7, %v2870_v14  ;;  %4481 = vrcp.f32 %v2750_v21  ;;  %v5822_v21 = vld [vmem:[#allocation20_spill] sm:$0xff] }
 0x43b   : > { %v4472_v43 = vpop.eup %4471  ;;  %v5829_v7 = vld [vmem:[#allocation28_spill] sm:$0xff] }
 0x43c   : > { %v2752_v52 = vpop.xlane.xlu0 %2751  ;;  %4098 = vmatpush3.bf16.xpose.msra.mxu1 %v4097_v3  ;;  %v2908_v19 = vmul.f32 %v4472_v43, %v5467_v57  ;;  %v4474_v53 = vpop.eup %4473 }
 0x43d   : > { %4483 = vrcp.f32 %v2752_v52  ;;  %4099 = vmatprep.subr.bf16.mxu1 %v5808_v4  ;;  %v2874_v60 = vmul.f32 %v4474_v53, %v5818_v26  ;;  %v5833_v26 = vld [vmem:[#allocation30_spill] sm:$0xff] }
 0x43e   : > { %v4124_v29 = vpack.c.bf16 %v2908_v19, %v2906_v15  ;;  %4485 = vrcp.f32 %v2786_v32  ;;  %v5830_v15 = vld [vmem:[#allocation29_spill] sm:$0xff] }
 0x43f   : > { %v4476_v50 = vpop.eup %4475 }
 0x440   : > { %v2788_v17 = vpop.xlane.xlu0 %2787  ;;  %4125 = vmatpush3.bf16.xpose.msra.mxu0 %v4124_v29  ;;  %v2876_v8 = vmul.f32 %v4476_v50, %v5476_v63  ;;  %v4478_v13 = vpop.eup %4477  ;;  %v5832_v50 = vld [vmem:[#allocation19_spill] sm:$0xff] }
 0x441   : > { %4487 = vrcp.f32 %v2788_v17  ;;  %4126 = vmatprep.subr.bf16.mxu0 %v5808_v4  ;;  %v2910_v25 = vmul.f32 %v4478_v13, %v5442_v45  ;;  %v2794_v45 = vpop.xlane.xlu1 %2793 }
 0x442   : > { %v4100_v35 = vpack.c.bf16 %v2876_v8, %v2874_v60  ;;  %4489 = vrcp.f32 %v2754_v30 }
 0x443   : > { %v4480_v57 = vpop.eup %4479 }
 0x444   : > { %v2756_v33 = vpop.xlane.xlu0 %2755  ;;  %4101 = vmatpush3.bf16.xpose.msra.mxu1 %v4100_v35  ;;  %v2912_v24 = vmul.f32 %v4480_v57, %v5819_v55  ;;  %v4482_v38 = vpop.eup %4481 }
 0x445   : > { %4491 = vrcp.f32 %v2756_v33  ;;  %4102 = vmatprep.subr.bf16.mxu1 %v5808_v4  ;;  %v2878_v59 = vmul.f32 %v4482_v38, %v5820_v42  ;;  %v2762_v62 = vpop.xlane.xlu1 %2761 }
 0x446   : > { %v4127_v40 = vpack.c.bf16 %v2912_v24, %v2910_v25  ;;  %4493 = vrcp.f32 %v2790_v23  ;;  %v5831_v23 = vld [vmem:[#allocation23_spill] sm:$0xff] }
 0x447   : > { %v4484_v63 = vpop.eup %4483 }
 0x448   : > { %v2792_v61 = vpop.xlane.xlu0 %2791  ;;  %4128 = vmatpush3.bf16.xpose.msra.mxu0 %v4127_v40  ;;  %v2880_v51 = vmul.f32 %v4484_v63, %v5821_v1  ;;  %v4486_v36 = vpop.eup %4485 }
 0x449   : > { %4495 = vrcp.f32 %v2792_v61  ;;  %4129 = vmatprep.subr.bf16.mxu0 %v5808_v4  ;;  %v2914_v22 = vmul.f32 %v4486_v36, %v5822_v21  ;;  %v304_v35 = vpop.permute.xlu1 %303 }
 0x44a   : > { %v4103_v48 = vpack.c.bf16 %v2880_v51, %v2878_v59  ;;  %4497 = vrcp.f32 %v2758_v18  ;;  %v5834_v18 = vld [vmem:[#allocation8_spill] sm:$0xff] }
 0x44b   : > { %v4488_v16 = vpop.eup %4487  ;;  %v465_v33 = vadd.f32 %v5834_v18, %v304_v35 }
 0x44c   : > { %v2760_v54 = vpop.xlane.xlu0 %2759  ;;  %4104 = vmatpush3.bf16.xpose.msra.mxu1 %v4103_v48  ;;  %v2916_v34 = vmul.f32 %v4488_v16, %v5823_v39  ;;  %v4490_v11 = vpop.eup %4489 }
 0x44d   : > { %4499 = vrcp.f32 %v2760_v54  ;;  %4105 = vmatprep.subr.bf16.mxu1 %v5808_v4  ;;  %v2882_v41 = vmul.f32 %v4490_v11, %v5824_v0 }
 0x44e   : > { %v4130_v2 = vpack.c.bf16 %v2916_v34, %v2914_v22 }
 0x44f   : > { %v4492_v10 = vpop.eup %4491 }
 0x450   : > { %v2764_v12 = vpop.xlane.xlu0 %2763  ;;  %4131 = vmatpush3.bf16.xpose.msra.mxu0 %v4130_v2  ;;  %v2884_v32 = vmul.f32 %v4492_v10, %v5825_v6  ;;  %v4494_v31 = vpop.eup %4493 }
 0x451   : > { %4501 = vrcp.f32 %v2764_v12  ;;  %4132 = vmatprep.subr.bf16.mxu0 %v5808_v4  ;;  %v2918_v49 = vmul.f32 %v4494_v31, %v5826_v9 }
 0x452   : > { %4503 = vrcp.f32 %v2794_v45  ;;  %v4106_v56 = vpack.c.bf16 %v2884_v32, %v2882_v41 }
 0x453   : > { %v4496_v58 = vpop.eup %4495  ;;  %4505 = vrcp.f32 %v2762_v62 }
 0x454   : > { %v2796_v37 = vpop.xlane.xlu0 %2795  ;;  %4107 = vmatpush3.bf16.xpose.msra.mxu1 %v4106_v56  ;;  %v2920_v44 = vmul.f32 %v4496_v58, %v5827_v28  ;;  %v4498_v47 = vpop.eup %4497 }
 0x455   : > { %4507 = vrcp.f32 %v2796_v37  ;;  %4108 = vmatprep.subr.bf16.mxu1 %v5808_v4  ;;  %v2886_v14 = vmul.f32 %v4498_v47, %v5828_v5 }
 0x456   : > { %v4133_v30 = vpack.c.bf16 %v2920_v44, %v2918_v49 }
 0x457   : > { %v4500_v27 = vpop.eup %4499 }
 0x458   : > { %4134 = vmatpush3.bf16.xpose.msra.mxu0 %v4133_v30  ;;  %v2888_v20 = vmul.f32 %v4500_v27, %v5829_v7 }
 0x459   : > { %4135 = vmatprep.subr.bf16.mxu0 %v5808_v4 }
 0x45a   : > { %v4109_v3 = vpack.c.bf16 %v2888_v20, %v2886_v14 }
 0x45b   : > { %v4502_v43 = vpop.eup %4501 }
 0x45c   : > { %v4504_v52 = vpop.eup %4503  ;;  %4110 = vmatpush3.bf16.xpose.msra.mxu1 %v4109_v3  ;;  %v2892_v19 = vmul.f32 %v4502_v43, %v5830_v15  ;;  %v309_v57 = vpop.permute.xlu0 %308 }
 0x45d   : > { %v4506_v46 = vpop.eup %4505  ;;  %4111 = vmatprep.subr.bf16.mxu1 %v5808_v4  ;;  %v2922_v17 = vmul.f32 %v4504_v52, %v5832_v50  ;;  %v5835_v4 = vld [vmem:[#allocation7_spill] sm:$0xff] }
 0x45e   : > { %v2890_v29 = vmul.f32 %v4506_v46, %v5831_v23  ;;  %v470_v25 = vadd.f32 %v5835_v4, %v309_v57 }
 0x45f   : > { %v4508_v53 = vpop.eup %4507 }
 0x460   : > { %v2924_v60 = vmul.f32 %v4508_v53, %v5833_v26  ;;  %v4112_v8 = vpack.c.bf16 %v2892_v19, %v2890_v29 }
 0x462   : > { %v4136_v13 = vpack.c.bf16 %v2924_v60, %v2922_v17 }
 0x464   : > { %4113 = vmatpush3.bf16.xpose.msra.mxu1 %v4112_v8  ;;  %4137 = vmatpush3.bf16.xpose.msra.mxu0 %v4136_v13 }
 0x46b   : > { %3997 = vmatmul.mubr.f32.vlgmr.msra.gmra.mrb[40].mxu1 %v465_v33  ;;  %4032 = vmatmul.mubr.f32.vlgmr.msra.gmra.mrb[40].mxu0 %v470_v25 }
 0x4fa   : > { %v3061_v55 = vpop.f32.mrb[38].mxu0 }
 0x4fb   : > { %3206 = vst [vmem:[%s217_s6 + $0x8] sm:$0xff] %v3061_v55  ;;  %v3963_v24 = vpop.f32.mrb[39].mxu0 }
 0x4fe   : > { %v2991_v38 = vpop.f32.mrb[38].mxu1 }
 0x4ff   : > { %3205 = vst [vmem:[%s217_s6] sm:$0xff] %v2991_v38  ;;  %v3928_v40 = vpop.f32.mrb[39].mxu1 }
 0x53e   : > { %v3131_v63 = vpop.f32.mrb[40].mxu1  ;;  %v3201_v61 = vpop.f32.mrb[40].mxu0 }
 0x53f   : > { %3207 = vst [vmem:[%s217_s6 + $0x10] sm:$0xff] %v3131_v63  ;;  %3208 = vst [vmem:[%s217_s6 + $0x18] sm:$0xff] %v3201_v61  ;;  %v3998_v42 = vpop.f32.mrb[41].mxu1  ;;  %v4033_v59 = vpop.f32.mrb[41].mxu0 }
 0x540   : > { %4522 = shalt.err (!%p4519_p3)
}
 0x541   : > { %s4523_s16 = scalar_lea.hbm %s5658_s11, 512  ;;  %s4527_s25 = scalar_lea.hbm %s5706_s5, 1024 }
 0x542   : > { %p4524_p4 = scmp.ne.s32.totalorder %s5658_s11, %s4523_s16  ;;  %p4528_p9 = scmp.lt.u32.totalorder %s5658_s11, %s5706_s5 }
 0x543   : > { %p4529_p10 = scmp.lt.u32.totalorder %s4527_s25, %s4523_s16  ;;  %p4531_p12 = scmp.lt.u32.totalorder %s4523_s16, %s5658_s11 }
 0x544   : > { %p4525_p7 = pnand %p4524_p4, %p4648_p5 }
 0x545   : > { %p4530_p11 = por %p4529_p10, %p4528_p9 }
 0x546   : > { %p4526_p8 = pneg %p4525_p7 }
 0x547   : > { %p4532_p13 = por %p4531_p12, %p4530_p11 }
 0x549   : > { %p4533_p0 = pnand %p4532_p13, %p4526_p8 }
 0x54b   : > { %4536 = shalt.err (!%p4533_p0)
}
 0x54c   : > { %s4578_s6 = smov 128   ;;  %s4579_s8 = smov 8  }
 0x54d   : > { %4206 = dma.vmem_to_hbm [thread:$0]  (%p4648_p5), %s5653_s7, 512, %s5658_s11, %s5660_s12, %s4578_s6, %s4578_s6, %s4579_s8  }
 0x54e PF: > { %p4212_p1 = scmp.ge.s32.totalorder %s4571_s21, 2  ;;  %s3238_s9 = sand.u32 1, %s4559_s18  }
 0x54f   : > { %s3239_s10 = scalar_lea.sflag [#allocation3], %s3238_s9 }
 0x550   : > { %p4209_p2 = pnand %p4212_p1, %p4652_p6 }
 0x552   : > { %4554 = dma.done.wait (!%p4209_p2), %s3239_s10, 512  }
 0x553   : > { %4556 = vsyncadd (!%p4209_p2), %s3239_s10, 4294966784  ;;  %p15_p3 = scmp.ge.s32.totalorder %s4635_s24, 4   ;;  %s5836_s18 = smov %s4563_s19 }
 0x554   : > { %s5837_s19 = smov %s4567_s20  ;;  %s5838_s20 = smov %s4646_s27 }
 0x555   : > { %s5839_s21 = smov %s4635_s24  ;;  %17 = sbr.rel (!%p15_p3) target bundleno = 3 (0x3), region = 75 }
 0x55c   :  { %3244 = vsyncpa [#allocation3], 1 }
 0x55d   :  { %3246 = vsyncpa [#allocation3 + $0x1], 1 }

</bundles_post_ra>
